<compile_context>
chip_gen: v7x
topology: tpu7x:2x2x1
jax: 0.10.0
libtpu: 0.0.40
codegen_flags: <defaults>
</compile_context>

<pallas_src>
import jax
import jax.numpy as jnp
import numpy as np
from jax.experimental import pallas as pl
from jax.experimental.pallas import tpu as pltpu

_HP = jax.lax.Precision.HIGHEST


def _custom_rnn_scan_kernel(gt_ref,                         # (2,) SMEM: [gama, tau]
                            u_ref,                          # (1, T, I) inputs, this sequence
                            x0_ref, w0_ref, z0_ref,         # (1, 1, N/S/G) initial states
                            win1_ref, win2_ref,             # (I, N), (I, G)
                            c_ref, d_ref, f_ref, h_ref,     # (1, S), (G, S), (G, G), (S, G)
                            erow_ref, ecol_ref, ecolt_ref,  # (N, S), (N, S), (S, N) selectors
                            xseq_ref, wf_ref, zf_ref,       # outputs
                            x_s, w_s, z_s):                 # VMEM scratch: state carry
    t = pl.program_id(1)
    gama = gt_ref[0]
    tau = gt_ref[1]

    # Load this sequence's initial state into the VMEM state carry at t == 0.
    @pl.when(t == 0)
    def _():
        x_s[...] = x0_ref[0]
        w_s[...] = w0_ref[0]
        z_s[...] = z0_ref[0]

    x = x_s[...]                    # (1, N)
    w = w_s[...]                    # (1, S)  flat synapse state (row-major (N, N))
    z = z_s[...]                    # (1, G)
    u = u_ref[0, pl.ds(t, 1), :]    # (1, I)  input at this time step

    e_row = erow_ref[...]           # (N, S): e_row[i, k] = [k // N == i]
    e_col = ecol_ref[...]           # (N, S): e_col[i, k] = [k %  N == i]
    e_colt = ecolt_ref[...]         # (S, N): e_col transposed

    # --- neuron state update (uses OLD x, OLD w) -------------------------------
    # sigmoid(x) @ reshape(w, (N, N)) computed in flat space (no in-kernel reshape):
    #   out[j] = sum_k sigmoid(x)[k // N] * w[k] * [k % N == j]
    sx = jax.nn.sigmoid(x)
    sx_rep = jnp.dot(sx, e_row, precision=_HP,
                     preferred_element_type=jnp.float32)            # (1, S): sx[k//N]
    recur = jnp.dot(sx_rep * w, e_colt, precision=_HP,
                    preferred_element_type=jnp.float32)             # (1, N)
    x_new = (1.0 - gama) * x + gama * (
        recur + jnp.dot(u, win1_ref[...], precision=_HP,
                        preferred_element_type=jnp.float32))

    # --- flattened outer product of sigmoid(NEW x): of[k] = s[k//N] * s[k%N] ---
    sxn = jax.nn.sigmoid(x_new)
    of = (jnp.dot(sxn, e_row, precision=_HP, preferred_element_type=jnp.float32)
          * jnp.dot(sxn, e_col, precision=_HP, preferred_element_type=jnp.float32))

    # --- synapse state update (uses OLD z, OLD w); of @ diag(C) == of * C ------
    tz = jnp.tanh(z)
    w_new = (1.0 - gama) * w + gama * (
        of * c_ref[...]
        + jnp.dot(tz, d_ref[...], precision=_HP,
                  preferred_element_type=jnp.float32))

    # --- glia state update (uses OLD z) ----------------------------------------
    gt = gama * tau
    z_new = (1.0 - gt) * z + gt * (
        jnp.dot(tz, f_ref[...], precision=_HP, preferred_element_type=jnp.float32)
        + jnp.dot(of, h_ref[...], precision=_HP, preferred_element_type=jnp.float32)
        + jnp.dot(u, win2_ref[...], precision=_HP, preferred_element_type=jnp.float32))

    # --- carry state to next time step and emit outputs ------------------------
    x_s[...] = x_new
    w_s[...] = w_new
    z_s[...] = z_new

    xseq_ref[0, pl.ds(t, 1), :] = x_new   # per-step neuron state (VMEM-resident slab)
    wf_ref[0] = w_new                     # final synapse state (last write wins)
    zf_ref[0] = z_new                     # final glia state


def _selector_matrices(neuron_sz):
    n, s = neuron_sz, neuron_sz * neuron_sz
    k = np.arange(s)
    e_row = (k[None, :] // n == np.arange(n)[:, None]).astype(np.float32)   # (N, S)
    e_col = (k[None, :] % n == np.arange(n)[:, None]).astype(np.float32)    # (N, S)
    return jnp.asarray(e_row), jnp.asarray(e_col), jnp.asarray(e_col.T)


def custom_rnn_scan(inputs_seq, params, init_states=None, *, gama, tau):
    """Run the CustomRNN recurrence for T steps on B independent sequences.

    inputs_seq: (B, T, input_sz) f32
    init_states: optional (x0 (B, N), w0 (B, S), z0 (B, G)); zeros if None.
    Returns (x_seq (B, T, N), (x_T (B, N), w_T (B, S), z_T (B, G))).
    """
    W_in1 = jnp.asarray(params["W_in1"], jnp.float32)
    W_in2 = jnp.asarray(params["W_in2"], jnp.float32)
    C = jnp.asarray(params["C"], jnp.float32)
    D = jnp.asarray(params["D"], jnp.float32)
    F = jnp.asarray(params["F"], jnp.float32)
    H = jnp.asarray(params["H"], jnp.float32)

    B, T, input_sz = inputs_seq.shape
    assert W_in1.shape[0] == input_sz
    N = W_in1.shape[1]
    G = W_in2.shape[1]
    S = C.shape[0]
    assert S == N * N, "synapse_sz must equal neuron_sz**2 (required by the reshape)"

    if init_states is None:
        x0 = jnp.zeros((B, N), jnp.float32)
        w0 = jnp.zeros((B, S), jnp.float32)
        z0 = jnp.zeros((B, G), jnp.float32)
    else:
        x0, w0, z0 = init_states

    e_row, e_col, e_colt = _selector_matrices(N)
    c_row = C.reshape(1, S)
    gt_scalars = jnp.array([gama, tau], jnp.float32)

    out_shape = (
        jax.ShapeDtypeStruct((B, T, N), jnp.float32),   # x_t at every step
        jax.ShapeDtypeStruct((B, 1, S), jnp.float32),   # final w per sequence
        jax.ShapeDtypeStruct((B, 1, G), jnp.float32),   # final z per sequence
    )

    grid_spec = pltpu.PrefetchScalarGridSpec(
        num_scalar_prefetch=0,
        grid=(B, T),
        in_specs=[
            pl.BlockSpec(memory_space=pltpu.MemorySpace.SMEM),        # [gama, tau]
            pl.BlockSpec((1, T, input_sz), lambda b, t: (b, 0, 0)),   # inputs (whole seq)
            pl.BlockSpec((1, 1, N), lambda b, t: (b, 0, 0)),          # x0
            pl.BlockSpec((1, 1, S), lambda b, t: (b, 0, 0)),          # w0
            pl.BlockSpec((1, 1, G), lambda b, t: (b, 0, 0)),          # z0
            pl.BlockSpec((input_sz, N), lambda b, t: (0, 0)),         # W_in1 (resident)
            pl.BlockSpec((input_sz, G), lambda b, t: (0, 0)),         # W_in2
            pl.BlockSpec((1, S), lambda b, t: (0, 0)),                # C
            pl.BlockSpec((G, S), lambda b, t: (0, 0)),                # D
            pl.BlockSpec((G, G), lambda b, t: (0, 0)),                # F
            pl.BlockSpec((S, G), lambda b, t: (0, 0)),                # H
            pl.BlockSpec((N, S), lambda b, t: (0, 0)),                # E_row
            pl.BlockSpec((N, S), lambda b, t: (0, 0)),                # E_col
            pl.BlockSpec((S, N), lambda b, t: (0, 0)),                # E_col^T
        ],
        out_specs=(
            pl.BlockSpec((1, T, N), lambda b, t: (b, 0, 0)),
            pl.BlockSpec((1, 1, S), lambda b, t: (b, 0, 0)),
            pl.BlockSpec((1, 1, G), lambda b, t: (b, 0, 0)),
        ),
        scratch_shapes=[
            pltpu.VMEM((1, N), jnp.float32),   # x state carry
            pltpu.VMEM((1, S), jnp.float32),   # w state carry (flat)
            pltpu.VMEM((1, G), jnp.float32),   # z state carry
        ],
    )

    x_seq, w_f, z_f = pl.pallas_call(
        _custom_rnn_scan_kernel,
        out_shape=out_shape,
        grid_spec=grid_spec,
        compiler_params=pltpu.CompilerParams(
            dimension_semantics=("parallel", "arbitrary")),
    )(gt_scalars, inputs_seq,
      x0[:, None, :], w0[:, None, :], z0[:, None, :],
      W_in1, W_in2, c_row, D, F, H, e_row, e_col, e_colt)

    x_f = x_seq[:, -1, :]
    return x_seq, (x_f, w_f[:, 0, :], z_f[:, 0, :])


def custom_rnn_forward(inputs, params, init_states=None, *, gama, tau):
    """Exact equivalent of CustomRNN.forward: one step, state rows shaped (1, dim)."""
    x_seq, (x_f, w_f, z_f) = custom_rnn_scan(
        inputs[:, None, :], params, init_states, gama=gama, tau=tau)
    x_new = x_seq[:, 0, :]
    return x_new, (x_new, w_f, z_f)


# ----------------------------- pure-JAX reference ------------------------------

def _reference_forward(inputs, params, init_states, *, gama, tau):
    """Mirrors the PyTorch module line by line (f32, HIGHEST matmul precision)."""
    W_in1, W_in2, C, D, F, H = (params["W_in1"], params["W_in2"], params["C"],
                                params["D"], params["F"], params["H"])
    N = W_in1.shape[1]
    x_t, w_t, z_t = init_states
    x_t = (1 - gama) * x_t + gama * (
        jnp.dot(jax.nn.sigmoid(x_t), w_t.reshape(N, N), precision=_HP)
        + jnp.dot(inputs, W_in1, precision=_HP))
    s = jax.nn.sigmoid(x_t)
    of = (s.reshape(-1, 1) * s.reshape(1, -1)).reshape(1, -1)   # == s^T @ s, flattened
    w_t = (1 - gama) * w_t + gama * (of * C.reshape(1, -1)
                                     + jnp.dot(jnp.tanh(z_t), D, precision=_HP))
    z_t = (1 - gama * tau) * z_t + gama * tau * (
        jnp.dot(jnp.tanh(z_t), F, precision=_HP)
        + jnp.dot(of, H, precision=_HP)
        + jnp.dot(inputs, W_in2, precision=_HP))
    return x_t, (x_t, w_t, z_t)


def _reference_rollout(inputs_seq, params, gama, tau):
    B, T, _ = inputs_seq.shape
    N = params["W_in1"].shape[1]
    S = params["C"].shape[0]
    G = params["W_in2"].shape[1]
    xs_all, xf_all, wf_all, zf_all = [], [], [], []
    for b in range(B):
        state = (jnp.zeros((1, N), jnp.float32),
                 jnp.zeros((1, S), jnp.float32),
                 jnp.zeros((1, G), jnp.float32))
        xs = []
        for t in range(T):
            out, state = _reference_forward(inputs_seq[b, t][None, :], params, state,
                                            gama=gama, tau=tau)
            xs.append(out[0])
        xs_all.append(jnp.stack(xs))
        xf_all.append(state[0][0])
        wf_all.append(state[1][0])
        zf_all.append(state[2][0])
    return (jnp.stack(xs_all), jnp.stack(xf_all),
            jnp.stack(wf_all), jnp.stack(zf_all))


if __name__ == "__main__":
    # Small, shape-consistent config: synapse_sz == neuron_sz ** 2.
    input_sz, neuron_sz, glia_sz = 8, 16, 32
    synapse_sz = neuron_sz * neuron_sz   # 256
    gama, tau = 0.1, 0.5

    key = jax.random.PRNGKey(0)
    k1, k2, k3, k4, k5, k6, k7, k8 = jax.random.split(key, 8)

    # Deterministic parameter init matching the module's __init__ distributions.
    params = {
        "W_in1": jax.random.normal(k1, (input_sz, neuron_sz), jnp.float32),
        "W_in2": jax.random.normal(k2, (input_sz, glia_sz), jnp.float32),
        "C": jax.random.normal(k3, (synapse_sz,), jnp.float32) / np.sqrt(synapse_sz),
        "D": jax.random.normal(k4, (glia_sz, synapse_sz), jnp.float32) / np.sqrt(synapse_sz),
        "F": jax.random.normal(k5, (glia_sz, glia_sz), jnp.float32) / np.sqrt(glia_sz),
        "H": jax.random.normal(k6, (synapse_sz, glia_sz), jnp.float32) / np.sqrt(glia_sz),
    }

    # --- Test 1: exact module semantics (single step, default zero init states) ---
    inputs = jax.random.normal(k7, (1, input_sz), jnp.float32)
    out, (x1, w1, z1) = custom_rnn_forward(inputs, params, None, gama=gama, tau=tau)
    jax.block_until_ready((out, x1, w1, z1))

    zero_states = (jnp.zeros((1, neuron_sz), jnp.float32),
                   jnp.zeros((1, synapse_sz), jnp.float32),
                   jnp.zeros((1, glia_sz), jnp.float32))
    ref_out, (rx, rw, rz) = _reference_forward(inputs, params, zero_states,
                                               gama=gama, tau=tau)
    assert out.shape == (1, neuron_sz)
    assert w1.shape == (1, synapse_sz)
    assert z1.shape == (1, glia_sz)
    np.testing.assert_allclose(np.asarray(x1), np.asarray(rx), rtol=1e-4, atol=1e-4)
    np.testing.assert_allclose(np.asarray(w1), np.asarray(rw), rtol=1e-4, atol=1e-4)
    np.testing.assert_allclose(np.asarray(z1), np.asarray(rz), rtol=1e-4, atol=1e-4)

    # --- Test 2: in-kernel rollout — B=2 sequences, T=8 steps, one pallas_call ---
    B, T = 2, 8
    useq = jax.random.normal(k8, (B, T, input_sz), jnp.float32)
    x_seq, (x_f, w_f, z_f) = custom_rnn_scan(useq, params, None, gama=gama, tau=tau)
    jax.block_until_ready((x_seq, x_f, w_f, z_f))

    xs_r, xf_r, wf_r, zf_r = _reference_rollout(useq, params, gama, tau)
    np.testing.assert_allclose(np.asarray(x_seq), np.asarray(xs_r), rtol=1e-4, atol=1e-4)
    np.testing.assert_allclose(np.asarray(x_f), np.asarray(xf_r), rtol=1e-4, atol=1e-4)
    np.testing.assert_allclose(np.asarray(w_f), np.asarray(wf_r), rtol=1e-4, atol=1e-4)
    np.testing.assert_allclose(np.asarray(z_f), np.asarray(zf_r), rtol=1e-4, atol=1e-4)

    print("KERNEL_OK")
</pallas_src>

<mosaic_0001>
module attributes {stable_mosaic.version = 11 : i64} {
  func.func @_custom_rnn_scan_kernel(%arg0: i32, %arg1: i32, %arg2: memref<2xf32, #tpu.memory_space<smem>>, %arg3: memref<1x1x8xf32, #tpu.memory_space<vmem>>, %arg4: memref<1x1x16xf32, #tpu.memory_space<vmem>>, %arg5: memref<1x1x256xf32, #tpu.memory_space<vmem>>, %arg6: memref<1x1x32xf32, #tpu.memory_space<vmem>>, %arg7: memref<8x16xf32, #tpu.memory_space<vmem>>, %arg8: memref<8x32xf32, #tpu.memory_space<vmem>>, %arg9: memref<1x256xf32, #tpu.memory_space<vmem>>, %arg10: memref<32x256xf32, #tpu.memory_space<vmem>>, %arg11: memref<32x32xf32, #tpu.memory_space<vmem>>, %arg12: memref<256x32xf32, #tpu.memory_space<vmem>>, %arg13: memref<16x256xf32, #tpu.memory_space<vmem>>, %arg14: memref<16x256xf32, #tpu.memory_space<vmem>>, %arg15: memref<256x16xf32, #tpu.memory_space<vmem>>, %arg16: memref<1x1x16xf32, #tpu.memory_space<vmem>>, %arg17: memref<1x1x256xf32, #tpu.memory_space<vmem>>, %arg18: memref<1x1x32xf32, #tpu.memory_space<vmem>>, %arg19: memref<1x16xf32, #tpu.memory_space<vmem>>, %arg20: memref<1x256xf32, #tpu.memory_space<vmem>>, %arg21: memref<1x32xf32, #tpu.memory_space<vmem>>) attributes {dimension_semantics = [#tpu.dimension_semantics<parallel>, #tpu.dimension_semantics<arbitrary>], iteration_bounds = array<i64: 1, 1>, scalar_prefetch = 0 : i64, scratch_operands = 3 : i64, tpu.core_type = #tpu.core_type<tc>, window_params = [{transform_indices = @transform_0, window_bounds = array<i64: 2>}, {transform_indices = @transform_1, window_bounds = array<i64: 1, 1, 8>}, {transform_indices = @transform_2, window_bounds = array<i64: 1, 1, 16>}, {transform_indices = @transform_3, window_bounds = array<i64: 1, 1, 256>}, {transform_indices = @transform_4, window_bounds = array<i64: 1, 1, 32>}, {pipeline_mode = #tpu.pipeline_mode<synchronous>, transform_indices = @transform_5, window_bounds = array<i64: 8, 16>}, {pipeline_mode = #tpu.pipeline_mode<synchronous>, transform_indices = @transform_6, window_bounds = array<i64: 8, 32>}, {pipeline_mode = #tpu.pipeline_mode<synchronous>, transform_indices = @transform_7, window_bounds = array<i64: 1, 256>}, {pipeline_mode = #tpu.pipeline_mode<synchronous>, transform_indices = @transform_8, window_bounds = array<i64: 32, 256>}, {pipeline_mode = #tpu.pipeline_mode<synchronous>, transform_indices = @transform_9, window_bounds = array<i64: 32, 32>}, {pipeline_mode = #tpu.pipeline_mode<synchronous>, transform_indices = @transform_10, window_bounds = array<i64: 256, 32>}, {pipeline_mode = #tpu.pipeline_mode<synchronous>, transform_indices = @transform_11, window_bounds = array<i64: 16, 256>}, {pipeline_mode = #tpu.pipeline_mode<synchronous>, transform_indices = @transform_12, window_bounds = array<i64: 16, 256>}, {pipeline_mode = #tpu.pipeline_mode<synchronous>, transform_indices = @transform_13, window_bounds = array<i64: 256, 16>}, {transform_indices = @transform_14, window_bounds = array<i64: 1, 1, 16>}, {transform_indices = @transform_15, window_bounds = array<i64: 1, 1, 256>}, {transform_indices = @transform_16, window_bounds = array<i64: 1, 1, 32>}]} {
    %c0 = arith.constant 0 : index
    %0 = memref.load %arg2[%c0] : memref<2xf32, #tpu.memory_space<smem>>
    %c1 = arith.constant 1 : index
    %1 = memref.load %arg2[%c1] : memref<2xf32, #tpu.memory_space<smem>>
    %c0_i32 = arith.constant 0 : i32
    %2 = arith.cmpi eq, %arg1, %c0_i32 : i32
    %3 = arith.extui %2 : i1 to i32
    %c0_i32_0 = arith.constant 0 : i32
    %4 = arith.cmpi ne, %3, %c0_i32_0 : i32
    scf.if %4 {
      %c0_54 = arith.constant 0 : index
      %c0_55 = arith.constant 0 : index
      %c0_56 = arith.constant 0 : index
      %79 = vector.load %arg4[%c0_54, %c0_55, %c0_56] : memref<1x1x16xf32, #tpu.memory_space<vmem>>, vector<1x1x16xf32>
      %80 = vector.shape_cast %79 : vector<1x1x16xf32> to vector<1x16xf32>
      %c0_57 = arith.constant 0 : index
      %c0_58 = arith.constant 0 : index
      %81 = vector.load %arg19[%c0_57, %c0_58] : memref<1x16xf32, #tpu.memory_space<vmem>>, vector<1x16xf32>
      tpu.vector_store %arg19[%c0_57, %c0_58], %80 {strides = array<i32>} : memref<1x16xf32, #tpu.memory_space<vmem>>, vector<1x16xf32>,
      %c0_59 = arith.constant 0 : index
      %c0_60 = arith.constant 0 : index
      %c0_61 = arith.constant 0 : index
      %82 = vector.load %arg5[%c0_59, %c0_60, %c0_61] : memref<1x1x256xf32, #tpu.memory_space<vmem>>, vector<1x1x256xf32>
      %83 = vector.shape_cast %82 : vector<1x1x256xf32> to vector<1x256xf32>
      %c0_62 = arith.constant 0 : index
      %c0_63 = arith.constant 0 : index
      %84 = vector.load %arg20[%c0_62, %c0_63] : memref<1x256xf32, #tpu.memory_space<vmem>>, vector<1x256xf32>
      tpu.vector_store %arg20[%c0_62, %c0_63], %83 {strides = array<i32>} : memref<1x256xf32, #tpu.memory_space<vmem>>, vector<1x256xf32>,
      %c0_64 = arith.constant 0 : index
      %c0_65 = arith.constant 0 : index
      %c0_66 = arith.constant 0 : index
      %85 = vector.load %arg6[%c0_64, %c0_65, %c0_66] : memref<1x1x32xf32, #tpu.memory_space<vmem>>, vector<1x1x32xf32>
      %86 = vector.shape_cast %85 : vector<1x1x32xf32> to vector<1x32xf32>
      %c0_67 = arith.constant 0 : index
      %c0_68 = arith.constant 0 : index
      %87 = vector.load %arg21[%c0_67, %c0_68] : memref<1x32xf32, #tpu.memory_space<vmem>>, vector<1x32xf32>
      tpu.vector_store %arg21[%c0_67, %c0_68], %86 {strides = array<i32>} : memref<1x32xf32, #tpu.memory_space<vmem>>, vector<1x32xf32>,
    } else {
    }
    %c0_1 = arith.constant 0 : index
    %c0_2 = arith.constant 0 : index
    %5 = vector.load %arg19[%c0_1, %c0_2] : memref<1x16xf32, #tpu.memory_space<vmem>>, vector<1x16xf32>
    %c0_3 = arith.constant 0 : index
    %c0_4 = arith.constant 0 : index
    %6 = vector.load %arg20[%c0_3, %c0_4] : memref<1x256xf32, #tpu.memory_space<vmem>>, vector<1x256xf32>
    %c0_5 = arith.constant 0 : index
    %c0_6 = arith.constant 0 : index
    %7 = vector.load %arg21[%c0_5, %c0_6] : memref<1x32xf32, #tpu.memory_space<vmem>>, vector<1x32xf32>
    %c0_7 = arith.constant 0 : index
    %8 = arith.index_cast %arg1 : i32 to index
    %c0_8 = arith.constant 0 : index
    %9 = vector.load %arg3[%c0_7, %8, %c0_8] : memref<1x1x8xf32, #tpu.memory_space<vmem>>, vector<1x1x8xf32>
    %10 = vector.shape_cast %9 : vector<1x1x8xf32> to vector<1x8xf32>
    %c0_9 = arith.constant 0 : index
    %c0_10 = arith.constant 0 : index
    %11 = vector.load %arg13[%c0_9, %c0_10] : memref<16x256xf32, #tpu.memory_space<vmem>>, vector<16x256xf32>
    %c0_11 = arith.constant 0 : index
    %c0_12 = arith.constant 0 : index
    %12 = vector.load %arg14[%c0_11, %c0_12] : memref<16x256xf32, #tpu.memory_space<vmem>>, vector<16x256xf32>
    %c0_13 = arith.constant 0 : index
    %c0_14 = arith.constant 0 : index
    %13 = vector.load %arg15[%c0_13, %c0_14] : memref<256x16xf32, #tpu.memory_space<vmem>>, vector<256x16xf32>
    %14 = arith.negf %5 : vector<1x16xf32>
    %15 = math.exp %14 : vector<1x16xf32>
    %cst = arith.constant 1.000000e+00 : f32
    %16 = vector.broadcast %cst : f32 to vector<1x16xf32>
    %17 = arith.addf %16, %15 : vector<1x16xf32>
    %18 = arith.divf %16, %17 : vector<1x16xf32>
    %cst_15 = arith.constant dense<0.000000e+00> : vector<1x256xf32>
    %19 = tpu.matmul %18, %11, %cst_15 {dimension_numbers = #tpu.dot_dimension_numbers<[1], [0], [0], [1], [0, 0, 1, 1], [], []>, precision = #tpu.contract_precision<fp32>} : vector<1x16xf32>, vector<16x256xf32>, vector<1x256xf32> -> vector<1x256xf32>
    %20 = arith.mulf %19, %6 : vector<1x256xf32>
    %cst_16 = arith.constant dense<0.000000e+00> : vector<1x16xf32>
    %21 = tpu.matmul %20, %13, %cst_16 {dimension_numbers = #tpu.dot_dimension_numbers<[1], [0], [0], [1], [0, 0, 1, 1], [], []>, precision = #tpu.contract_precision<fp32>} : vector<1x256xf32>, vector<256x16xf32>, vector<1x16xf32> -> vector<1x16xf32>
    %cst_17 = arith.constant 1.000000e+00 : f32
    %22 = arith.subf %cst_17, %0 : f32
    %23 = vector.broadcast %22 : f32 to vector<1x16xf32>
    %24 = arith.mulf %23, %5 : vector<1x16xf32>
    %c0_18 = arith.constant 0 : index
    %c0_19 = arith.constant 0 : index
    %25 = vector.load %arg7[%c0_18, %c0_19] : memref<8x16xf32, #tpu.memory_space<vmem>>, vector<8x16xf32>
    %cst_20 = arith.constant dense<0.000000e+00> : vector<1x16xf32>
    %26 = tpu.matmul %10, %25, %cst_20 {dimension_numbers = #tpu.dot_dimension_numbers<[1], [0], [0], [1], [0, 0, 1, 1], [], []>, precision = #tpu.contract_precision<fp32>} : vector<1x8xf32>, vector<8x16xf32>, vector<1x16xf32> -> vector<1x16xf32>
    %27 = arith.addf %21, %26 : vector<1x16xf32>
    %28 = vector.broadcast %0 : f32 to vector<1x16xf32>
    %29 = arith.mulf %28, %27 : vector<1x16xf32>
    %30 = arith.addf %24, %29 : vector<1x16xf32>
    %31 = arith.negf %30 : vector<1x16xf32>
    %32 = math.exp %31 : vector<1x16xf32>
    %cst_21 = arith.constant 1.000000e+00 : f32
    %33 = vector.broadcast %cst_21 : f32 to vector<1x16xf32>
    %34 = arith.addf %33, %32 : vector<1x16xf32>
    %35 = arith.divf %33, %34 : vector<1x16xf32>
    %cst_22 = arith.constant dense<0.000000e+00> : vector<1x256xf32>
    %36 = tpu.matmul %35, %11, %cst_22 {dimension_numbers = #tpu.dot_dimension_numbers<[1], [0], [0], [1], [0, 0, 1, 1], [], []>, precision = #tpu.contract_precision<fp32>} : vector<1x16xf32>, vector<16x256xf32>, vector<1x256xf32> -> vector<1x256xf32>
    %cst_23 = arith.constant dense<0.000000e+00> : vector<1x256xf32>
    %37 = tpu.matmul %35, %12, %cst_23 {dimension_numbers = #tpu.dot_dimension_numbers<[1], [0], [0], [1], [0, 0, 1, 1], [], []>, precision = #tpu.contract_precision<fp32>} : vector<1x16xf32>, vector<16x256xf32>, vector<1x256xf32> -> vector<1x256xf32>
    %38 = arith.mulf %36, %37 : vector<1x256xf32>
    %39 = math.tanh %7 : vector<1x32xf32>
    %cst_24 = arith.constant 1.000000e+00 : f32
    %40 = arith.subf %cst_24, %0 : f32
    %41 = vector.broadcast %40 : f32 to vector<1x256xf32>
    %42 = arith.mulf %41, %6 : vector<1x256xf32>
    %c0_25 = arith.constant 0 : index
    %c0_26 = arith.constant 0 : index
    %43 = vector.load %arg9[%c0_25, %c0_26] : memref<1x256xf32, #tpu.memory_space<vmem>>, vector<1x256xf32>
    %44 = arith.mulf %38, %43 : vector<1x256xf32>
    %c0_27 = arith.constant 0 : index
    %c0_28 = arith.constant 0 : index
    %45 = vector.load %arg10[%c0_27, %c0_28] : memref<32x256xf32, #tpu.memory_space<vmem>>, vector<32x256xf32>
    %cst_29 = arith.constant dense<0.000000e+00> : vector<1x256xf32>
    %46 = tpu.matmul %39, %45, %cst_29 {dimension_numbers = #tpu.dot_dimension_numbers<[1], [0], [0], [1], [0, 0, 1, 1], [], []>, precision = #tpu.contract_precision<fp32>} : vector<1x32xf32>, vector<32x256xf32>, vector<1x256xf32> -> vector<1x256xf32>
    %47 = arith.addf %44, %46 : vector<1x256xf32>
    %48 = vector.broadcast %0 : f32 to vector<1x256xf32>
    %49 = arith.mulf %48, %47 : vector<1x256xf32>
    %50 = arith.addf %42, %49 : vector<1x256xf32>
    %51 = arith.mulf %0, %1 : f32
    %cst_30 = arith.constant 1.000000e+00 : f32
    %52 = arith.subf %cst_30, %51 : f32
    %53 = vector.broadcast %52 : f32 to vector<1x32xf32>
    %54 = arith.mulf %53, %7 : vector<1x32xf32>
    %c0_31 = arith.constant 0 : index
    %c0_32 = arith.constant 0 : index
    %55 = vector.load %arg11[%c0_31, %c0_32] : memref<32x32xf32, #tpu.memory_space<vmem>>, vector<32x32xf32>
    %cst_33 = arith.constant dense<0.000000e+00> : vector<1x32xf32>
    %56 = tpu.matmul %39, %55, %cst_33 {dimension_numbers = #tpu.dot_dimension_numbers<[1], [0], [0], [1], [0, 0, 1, 1], [], []>, precision = #tpu.contract_precision<fp32>} : vector<1x32xf32>, vector<32x32xf32>, vector<1x32xf32> -> vector<1x32xf32>
    %c0_34 = arith.constant 0 : index
    %c0_35 = arith.constant 0 : index
    %57 = vector.load %arg12[%c0_34, %c0_35] : memref<256x32xf32, #tpu.memory_space<vmem>>, vector<256x32xf32>
    %cst_36 = arith.constant dense<0.000000e+00> : vector<1x32xf32>
    %58 = tpu.matmul %38, %57, %cst_36 {dimension_numbers = #tpu.dot_dimension_numbers<[1], [0], [0], [1], [0, 0, 1, 1], [], []>, precision = #tpu.contract_precision<fp32>} : vector<1x256xf32>, vector<256x32xf32>, vector<1x32xf32> -> vector<1x32xf32>
    %59 = arith.addf %56, %58 : vector<1x32xf32>
    %c0_37 = arith.constant 0 : index
    %c0_38 = arith.constant 0 : index
    %60 = vector.load %arg8[%c0_37, %c0_38] : memref<8x32xf32, #tpu.memory_space<vmem>>, vector<8x32xf32>
    %cst_39 = arith.constant dense<0.000000e+00> : vector<1x32xf32>
    %61 = tpu.matmul %10, %60, %cst_39 {dimension_numbers = #tpu.dot_dimension_numbers<[1], [0], [0], [1], [0, 0, 1, 1], [], []>, precision = #tpu.contract_precision<fp32>} : vector<1x8xf32>, vector<8x32xf32>, vector<1x32xf32> -> vector<1x32xf32>
    %62 = arith.addf %59, %61 : vector<1x32xf32>
    %63 = vector.broadcast %51 : f32 to vector<1x32xf32>
    %64 = arith.mulf %63, %62 : vector<1x32xf32>
    %65 = arith.addf %54, %64 : vector<1x32xf32>
    %c0_40 = arith.constant 0 : index
    %c0_41 = arith.constant 0 : index
    %66 = vector.load %arg19[%c0_40, %c0_41] : memref<1x16xf32, #tpu.memory_space<vmem>>, vector<1x16xf32>
    tpu.vector_store %arg19[%c0_40, %c0_41], %30 {strides = array<i32>} : memref<1x16xf32, #tpu.memory_space<vmem>>, vector<1x16xf32>,
    %c0_42 = arith.constant 0 : index
    %c0_43 = arith.constant 0 : index
    %67 = vector.load %arg20[%c0_42, %c0_43] : memref<1x256xf32, #tpu.memory_space<vmem>>, vector<1x256xf32>
    tpu.vector_store %arg20[%c0_42, %c0_43], %50 {strides = array<i32>} : memref<1x256xf32, #tpu.memory_space<vmem>>, vector<1x256xf32>,
    %c0_44 = arith.constant 0 : index
    %c0_45 = arith.constant 0 : index
    %68 = vector.load %arg21[%c0_44, %c0_45] : memref<1x32xf32, #tpu.memory_space<vmem>>, vector<1x32xf32>
    tpu.vector_store %arg21[%c0_44, %c0_45], %65 {strides = array<i32>} : memref<1x32xf32, #tpu.memory_space<vmem>>, vector<1x32xf32>,
    %c0_46 = arith.constant 0 : index
    %69 = arith.index_cast %arg1 : i32 to index
    %c0_47 = arith.constant 0 : index
    %70 = vector.load %arg16[%c0_46, %69, %c0_47] : memref<1x1x16xf32, #tpu.memory_space<vmem>>, vector<1x1x16xf32>
    %71 = vector.shape_cast %70 : vector<1x1x16xf32> to vector<1x16xf32>
    %72 = vector.shape_cast %30 : vector<1x16xf32> to vector<1x1x16xf32>
    tpu.vector_store %arg16[%c0_46, %69, %c0_47], %72 {strides = array<i32>} : memref<1x1x16xf32, #tpu.memory_space<vmem>>, vector<1x1x16xf32>,
    %c0_48 = arith.constant 0 : index
    %c0_49 = arith.constant 0 : index
    %c0_50 = arith.constant 0 : index
    %73 = vector.load %arg17[%c0_48, %c0_49, %c0_50] : memref<1x1x256xf32, #tpu.memory_space<vmem>>, vector<1x1x256xf32>
    %74 = vector.shape_cast %73 : vector<1x1x256xf32> to vector<1x256xf32>
    %75 = vector.shape_cast %50 : vector<1x256xf32> to vector<1x1x256xf32>
    tpu.vector_store %arg17[%c0_48, %c0_49, %c0_50], %75 {strides = array<i32>} : memref<1x1x256xf32, #tpu.memory_space<vmem>>, vector<1x1x256xf32>,
    %c0_51 = arith.constant 0 : index
    %c0_52 = arith.constant 0 : index
    %c0_53 = arith.constant 0 : index
    %76 = vector.load %arg18[%c0_51, %c0_52, %c0_53] : memref<1x1x32xf32, #tpu.memory_space<vmem>>, vector<1x1x32xf32>
    %77 = vector.shape_cast %76 : vector<1x1x32xf32> to vector<1x32xf32>
    %78 = vector.shape_cast %65 : vector<1x32xf32> to vector<1x1x32xf32>
    tpu.vector_store %arg18[%c0_51, %c0_52, %c0_53], %78 {strides = array<i32>} : memref<1x1x32xf32, #tpu.memory_space<vmem>>, vector<1x1x32xf32>,
    return
  }
  func.func @transform_0(%arg0: i32, %arg1: i32) -> i32 {
    %c0_i32 = arith.constant 0 : i32
    %c0_i32_0 = arith.constant 0 : i32
    return %c0_i32 : i32
  }
  func.func @transform_1(%arg0: i32, %arg1: i32) -> (i32, i32, i32) {
    %c0_i32 = arith.constant 0 : i32
    %c0_i32_0 = arith.constant 0 : i32
    %c0_i32_1 = arith.constant 0 : i32
    return %arg0, %c0_i32, %c0_i32_0 : i32, i32, i32
  }
  func.func @transform_2(%arg0: i32, %arg1: i32) -> (i32, i32, i32) {
    %c0_i32 = arith.constant 0 : i32
    %c0_i32_0 = arith.constant 0 : i32
    %c0_i32_1 = arith.constant 0 : i32
    return %arg0, %c0_i32, %c0_i32_0 : i32, i32, i32
  }
  func.func @transform_3(%arg0: i32, %arg1: i32) -> (i32, i32, i32) {
    %c0_i32 = arith.constant 0 : i32
    %c0_i32_0 = arith.constant 0 : i32
    %c0_i32_1 = arith.constant 0 : i32
    return %arg0, %c0_i32, %c0_i32_0 : i32, i32, i32
  }
  func.func @transform_4(%arg0: i32, %arg1: i32) -> (i32, i32, i32) {
    %c0_i32 = arith.constant 0 : i32
    %c0_i32_0 = arith.constant 0 : i32
    %c0_i32_1 = arith.constant 0 : i32
    return %arg0, %c0_i32, %c0_i32_0 : i32, i32, i32
  }
  func.func @transform_5(%arg0: i32, %arg1: i32) -> (i32, i32) {
    %c0_i32 = arith.constant 0 : i32
    %c0_i32_0 = arith.constant 0 : i32
    %c0_i32_1 = arith.constant 0 : i32
    return %c0_i32, %c0_i32_0 : i32, i32
  }
  func.func @transform_6(%arg0: i32, %arg1: i32) -> (i32, i32) {
    %c0_i32 = arith.constant 0 : i32
    %c0_i32_0 = arith.constant 0 : i32
    %c0_i32_1 = arith.constant 0 : i32
    return %c0_i32, %c0_i32_0 : i32, i32
  }
  func.func @transform_7(%arg0: i32, %arg1: i32) -> (i32, i32) {
    %c0_i32 = arith.constant 0 : i32
    %c0_i32_0 = arith.constant 0 : i32
    %c0_i32_1 = arith.constant 0 : i32
    return %c0_i32, %c0_i32_0 : i32, i32
  }
  func.func @transform_8(%arg0: i32, %arg1: i32) -> (i32, i32) {
    %c0_i32 = arith.constant 0 : i32
    %c0_i32_0 = arith.constant 0 : i32
    %c0_i32_1 = arith.constant 0 : i32
    return %c0_i32, %c0_i32_0 : i32, i32
  }
  func.func @transform_9(%arg0: i32, %arg1: i32) -> (i32, i32) {
    %c0_i32 = arith.constant 0 : i32
    %c0_i32_0 = arith.constant 0 : i32
    %c0_i32_1 = arith.constant 0 : i32
    return %c0_i32, %c0_i32_0 : i32, i32
  }
  func.func @transform_10(%arg0: i32, %arg1: i32) -> (i32, i32) {
    %c0_i32 = arith.constant 0 : i32
    %c0_i32_0 = arith.constant 0 : i32
    %c0_i32_1 = arith.constant 0 : i32
    return %c0_i32, %c0_i32_0 : i32, i32
  }
  func.func @transform_11(%arg0: i32, %arg1: i32) -> (i32, i32) {
    %c0_i32 = arith.constant 0 : i32
    %c0_i32_0 = arith.constant 0 : i32
    %c0_i32_1 = arith.constant 0 : i32
    return %c0_i32, %c0_i32_0 : i32, i32
  }
  func.func @transform_12(%arg0: i32, %arg1: i32) -> (i32, i32) {
    %c0_i32 = arith.constant 0 : i32
    %c0_i32_0 = arith.constant 0 : i32
    %c0_i32_1 = arith.constant 0 : i32
    return %c0_i32, %c0_i32_0 : i32, i32
  }
  func.func @transform_13(%arg0: i32, %arg1: i32) -> (i32, i32) {
    %c0_i32 = arith.constant 0 : i32
    %c0_i32_0 = arith.constant 0 : i32
    %c0_i32_1 = arith.constant 0 : i32
    return %c0_i32, %c0_i32_0 : i32, i32
  }
  func.func @transform_14(%arg0: i32, %arg1: i32) -> (i32, i32, i32) {
    %c0_i32 = arith.constant 0 : i32
    %c0_i32_0 = arith.constant 0 : i32
    %c0_i32_1 = arith.constant 0 : i32
    return %arg0, %c0_i32, %c0_i32_0 : i32, i32, i32
  }
  func.func @transform_15(%arg0: i32, %arg1: i32) -> (i32, i32, i32) {
    %c0_i32 = arith.constant 0 : i32
    %c0_i32_0 = arith.constant 0 : i32
    %c0_i32_1 = arith.constant 0 : i32
    return %arg0, %c0_i32, %c0_i32_0 : i32, i32, i32
  }
  func.func @transform_16(%arg0: i32, %arg1: i32) -> (i32, i32, i32) {
    %c0_i32 = arith.constant 0 : i32
    %c0_i32_0 = arith.constant 0 : i32
    %c0_i32_1 = arith.constant 0 : i32
    return %arg0, %c0_i32, %c0_i32_0 : i32, i32, i32
  }
}

</mosaic_0001>

<bundles_post_ra>
// kernel: tpu_custom_call.1
= control target key start
LH: loop header
LB: loop body
LE: loop exit
PB: predicated region body
PF: predicated region fallthrough
CT: control target
= control target key end

     0   :  { %s8332_s0 = inlined_call_operand.vmem [shape: f32[2], index: 0, kind: input, shape index: {}]   ;;  %s8333_s1 = inlined_call_operand.vmem [shape: f32[1,1,8], index: 1, kind: input, shape index: {}]   ;;  %s8334_s2 = inlined_call_operand.vmem [shape: f32[1,1,16], index: 2, kind: input, shape index: {}]   ;;  %s8335_s3 = inlined_call_operand.vmem [shape: f32[1,1,256], index: 3, kind: input, shape index: {}]   ;;  %s8336_s4 = inlined_call_operand.vmem [shape: f32[1,1,32], index: 4, kind: input, shape index: {}]   ;;  %s8337_s5 = inlined_call_operand.vmem [shape: f32[8,16], index: 5, kind: input, shape index: {}]   ;;  %s8338_s6 = inlined_call_operand.vmem [shape: f32[8,32], index: 6, kind: input, shape index: {}]   ;;  %s8339_s7 = inlined_call_operand.vmem [shape: f32[1,256], index: 7, kind: input, shape index: {}]   ;;  %s8340_s8 = inlined_call_operand.vmem [shape: f32[32,256], index: 8, kind: input, shape index: {}]   ;;  %s8341_s9 = inlined_call_operand.vmem [shape: f32[32,32], index: 9, kind: input, shape index: {}]   ;;  %s8342_s10 = inlined_call_operand.vmem [shape: f32[256,32], index: 10, kind: input, shape index: {}]   ;;  %s8343_s11 = inlined_call_operand.vmem [shape: f32[16,256], index: 11, kind: input, shape index: {}]   ;;  %s8344_s12 = inlined_call_operand.vmem [shape: f32[16,256], index: 12, kind: input, shape index: {}]   ;;  %s8345_s13 = inlined_call_operand.vmem [shape: f32[256,16], index: 13, kind: input, shape index: {}]   ;;  %s8346_s14 = inlined_call_operand.hbm [shape: f32[1,1,16], index: 14, kind: output, shape index: {0}]   ;;  %s8347_s15 = inlined_call_operand.hbm [shape: f32[1,1,256], index: 15, kind: output, shape index: {1}]   ;;  %s8348_s16 = inlined_call_operand.hbm [shape: f32[1,1,32], index: 16, kind: output, shape index: {2}]  }
   0x1   :  { %8442 = sst [smem:[#allocation38_spill]] %s8332_s0 }
   0x2   :  { %22 = vsyncpa [#allocation7], 0 }
   0x3   :  { %23 = vsyncpa [#allocation6], 0 }
   0x4   :  { %24 = vsyncpa [#allocation10], 0  ;;  %s8443_s23 = sld [smem:[#allocation38_spill]] }
   0xa   :  { %s31_s24 = sshll.u32 %s8443_s23, 4  ;;  %s32_s24 = int_to_ptr.vmem [resolvable:$true] %s31_s24 }
   0xb   :  { %s6666_s25 = scalar_lea.vmem %s32_s24, 16  ;;  %p6671_p1 = scmp.lt.s32.totalorder %s32_s24, %s32_s24 }
   0xc   :  { %p6667_p0 = scmp.ne.s32.totalorder %s32_s24, %s6666_s25  ;;  %p6672_p2 = scmp.lt.s32.totalorder %s6666_s25, %s6666_s25 }
   0xe   :  { %p6673_p3 = por %p6672_p2, %p6671_p1 }
  0x10   :  { %p6674_p4 = pnand %p6673_p3, %p6667_p0 }
  0x12   :  { %6677 = shalt.err (!%p6674_p4)
}
  0x13   :  { %s6750_s26 = smov [#allocation5]  }
  0x14   :  { %34 = dma.vmem_to_smem %s32_s24, 16, %s6750_s26, [#allocation7]  }
  0x15   :  { %6744 = dma.done.wait [#allocation7], 16  }
  0x16   :  { %6745 = vsyncadd [#allocation7], 4294967280 }
  0x17   :  { %64 = sfence }
  0x18   :  { %v88_v0 = vld [vmem:[%s8343_s11 + $0x8] sm:$0xff]  ;;  %v90_v1 = vld [vmem:[%s8343_s11 + $0x18] sm:$0xff]  ;;  %v87_v2 = vld [vmem:[%s8343_s11] sm:$0xff]  ;;  %vm72_vm0 = vcmask 122880   ;;  %v8349_v7 = vmov 0.0   ;;  %vm645_vm1 = vcmask 64512  }
  0x19   :  { %v137_v3 = vand.u32 4294901760, %v88_v0  ;;  %v141_v4 = vand.u32 4294901760, %v90_v1  ;;  %v89_v5 = vld [vmem:[%s8343_s11 + $0x10] sm:$0xff]  ;;  %v139_v6 = vand.u32 4294901760, %v87_v2  ;;  %301 = vmatprep.mubr.f32.mxu0 %v8349_v7  ;;  %v71_v8 = vld [vmem:[%s8334_s2] sm:$0x1]  ;;  %205 = vmatprep.mubr.f32.mxu1 %v8349_v7 }
  0x1a   :  { %v143_v9 = vand.u32 4294901760, %v89_v5  ;;  %73 = vst.msk [vmem:[#allocation2] sm:$0x1] %vm72_vm0, %v71_v8  ;;  %v86_v35 = vld [vmem:[%s8333_s1] sm:$0x1]  ;;  %vm133_vm2 = vcmask 130048  }
  0x1b   :  { %v6864_v10 = vpack.c.bf16 %v141_v4, %v137_v3  ;;  %v218_v11 = vsub.f32 %v88_v0, %v137_v3  ;;  %v230_v12 = vsub.f32 %v90_v1, %v141_v4  ;;  %v6866_v13 = vsub.f32 %v87_v2, %v139_v6  ;;  %v644_v37 = vld [vmem:[%s8337_s5] sm:$0xff]  ;;  %v112_v59 = vld [vmem:[%s8345_s13 + $0x88] sm:$0xff]  ;;  %v113_v0 = vld [vmem:[%s8345_s13 + $0x90] sm:$0xff]  ;;  %s7445_s2 = sld [smem:[#allocation5]]  ;;  %s6756_s21 = smov [#allocation8]  }
  0x1c   :  { %v6868_v14 = vpack.c.bf16 %v143_v9, %v139_v6  ;;  %v6870_v15 = vsub.f32 %v89_v5, %v143_v9  ;;  %v647_v36 = vsel %vm645_vm1, %v86_v35, 0  ;;  %v6898_v39 = vand.u32 4294901760, %v644_v37  ;;  %v111_v58 = vld [vmem:[%s8345_s13 + $0x80] sm:$0xff]  ;;  %v96_v63 = vld [vmem:[%s8345_s13 + $0x8] sm:$0xff]  ;;  %v114_v1 = vld [vmem:[%s8345_s13 + $0x98] sm:$0xff] }
  0x1d   :  { %v219_v16 = vand.u32 4294901760, %v218_v11  ;;  %v231_v17 = vand.u32 4294901760, %v230_v12  ;;  %v225_v18 = vand.u32 4294901760, %v6866_v13  ;;  %6043 = vmatprep.subr.bf16.mxu1 %v6864_v10  ;;  %v6883_v31 = vpack.c.bf16 %v230_v12, %v218_v11  ;;  %v95_v62 = vld [vmem:[%s8345_s13] sm:$0xff]  ;;  %v6976_v2 = vld [vmem:[%s8345_s13 + $0x10] sm:$0xff]  ;;  %v6981_v3 = vld [vmem:[%s8345_s13 + $0x18] sm:$0xff] }
  0x1e   :  { %v237_v19 = vand.u32 4294901760, %v6870_v15  ;;  %6045 = vmatpush1.bf16.msra.mxu1 %v6868_v14  ;;  %v6896_v38 = vand.u32 4294901760, %v647_v36  ;;  %v6906_v43 = vpack.c.bf16 %v6870_v15, %v6866_v13  ;;  %v6909_v44 = vsub.f32 %v644_v37, %v6898_v39 }
  0x1f   :  { %v220_v20 = vsub.f32 %v218_v11, %v219_v16  ;;  %v232_v21 = vsub.f32 %v230_v12, %v231_v17  ;;  %v226_v22 = vsub.f32 %v6866_v13, %v225_v18  ;;  %5916 = vmatprep.subr.mxu1 %v8349_v7  ;;  %8444 = vst [vmem:[#allocation15_spill] sm:$0xff] %v6883_v31  ;;  %vm6752_vm3 = vmmov 0  }
  0x20   :  { %v238_v23 = vsub.f32 %v6870_v15, %v237_v19  ;;  %8446 = vst [vmem:[#allocation17_spill] sm:$0xff] %v6896_v38  ;;  %v6901_v41 = vsub.f32 %v647_v36, %v6896_v38  ;;  %8448 = vst [vmem:[#allocation19_spill] sm:$0xff] %v6906_v43  ;;  %v728_v48 = vand.u32 4294901760, %v6909_v44  ;;  %v6927_v53 = vpack.c.bf16 %v231_v17, %v219_v16  ;;  %v115_v16 = vld [vmem:[%s8345_s13 + $0xa0] sm:$0xff]  ;;  %v116_v17 = vld [vmem:[%s8345_s13 + $0xa8] sm:$0xff] }
  0x21   :  { %v221_v24 = vand.u32 4294901760, %v220_v20  ;;  %v233_v25 = vand.u32 4294901760, %v232_v21  ;;  %v227_v26 = vand.u32 4294901760, %v226_v22  ;;  %v83_v27 = vld [vmem:[#allocation2] sm:$0x1]  ;;  %v6941_v57 = vpack.c.bf16 %v237_v19, %v225_v18  ;;  %v100_v22 = vld [vmem:[%s8345_s13 + $0x28] sm:$0xff] }
  0x22   :  { %v239_v28 = vand.u32 4294901760, %v238_v23  ;;  %v5440_v29 = vmul.f32 -1.442695, %v83_v27  ;;  %8447 = vst [vmem:[#allocation18_spill] sm:$0xff] %v6901_v41  ;;  %v6916_v47 = vand.u32 4294901760, %v6901_v41  ;;  %v729_v52 = vsub.f32 %v6909_v44, %v728_v48  ;;  %8450 = vst [vmem:[#allocation21_spill] sm:$0xff] %v6927_v53 }
  0x23   :  { %v6881_v30 = vpack.c.bf16 %v233_v25, %v221_v24  ;;  %8452 = vst [vmem:[#allocation23_spill] sm:$0xff] %v6941_v57  ;;  %v1144_v60 = vand.u32 4294901760, %v111_v58  ;;  %v1147_v61 = vand.u32 4294901760, %v112_v59  ;;  %v1096_v6 = vand.u32 4294901760, %v95_v62  ;;  %v99_v21 = vld [vmem:[%s8345_s13 + $0x20] sm:$0xff]  ;;  %v117_v27 = vld [vmem:[%s8345_s13 + $0xb0] sm:$0xff] }
  0x24   :  { %v6885_v32 = vpack.c.bf16 %v239_v28, %v227_v26  ;;  %6653 = vpow2.f32 %v5440_v29  ;;  %8449 = vst [vmem:[#allocation20_spill] sm:$0xff] %v6916_v47  ;;  %v718_v51 = vsub.f32 %v6901_v41, %v6916_v47  ;;  %v730_v56 = vand.u32 4294901760, %v729_v52  ;;  %v118_v28 = vld [vmem:[%s8345_s13 + $0xb8] sm:$0xff]  ;;  %v7066_v52 = vld [vmem:[%s8345_s13 + $0xc0] sm:$0xff] }
  0x25   :  { %6047 = vmatprep.subr.bf16.mxu0 %v6881_v30  ;;  %v6986_v4 = vsub.f32 %v111_v58, %v1144_v60  ;;  %v6988_v5 = vsub.f32 %v112_v59, %v1147_v61  ;;  %v1099_v8 = vand.u32 4294901760, %v96_v63  ;;  %v1150_v9 = vand.u32 4294901760, %v113_v0 }
  0x26   :  { %8445 = vst [vmem:[#allocation16_spill] sm:$0xff] %v6885_v32  ;;  %6049 = vmatpush1.bf16.msra.mxu0 %v6885_v32  ;;  %v6929_v55 = vand.u32 4294901760, %v718_v51  ;;  %v1153_v11 = vand.u32 4294901760, %v114_v1  ;;  %v1102_v12 = vand.u32 4294901760, %v6976_v2  ;;  %v1105_v13 = vand.u32 4294901760, %v6981_v3 }
  0x27   :  { %6051 = vmatprep.subr.bf16.mxu0 %v6883_v31  ;;  %v6993_v15 = vpack.c.bf16 %v1147_v61, %v1144_v60  ;;  %v6130_v18 = vpack.c.bf16 %v6988_v5, %v6986_v4  ;;  %v7007_v19 = vsub.f32 %v95_v62, %v1096_v6  ;;  %v7009_v20 = vsub.f32 %v96_v63, %v1099_v8 }
  0x28   :  { %8451 = vst [vmem:[#allocation22_spill] sm:$0xff] %v6929_v55  ;;  %v7021_v23 = vsub.f32 %v113_v0, %v1150_v9  ;;  %v7023_v24 = vsub.f32 %v114_v1, %v1153_v11  ;;  %v1156_v25 = vand.u32 4294901760, %v115_v16  ;;  %v1159_v26 = vand.u32 4294901760, %v116_v17 }
  0x29   :  { %v7033_v29 = vsub.f32 %v6976_v2, %v1102_v12  ;;  %v1111_v35 = vand.u32 4294901760, %v100_v22  ;;  %v6132_v36 = vpack.c.bf16 %v7009_v20, %v7007_v19  ;;  %v7045_v37 = vpack.c.bf16 %v1099_v8, %v1096_v6  ;;  %v104_v6 = vld [vmem:[%s8345_s13 + $0x48] sm:$0xff]  ;;  %v7102_v8 = vld [vmem:[%s8345_s13 + $0xd0] sm:$0xff] }
  0x2a   :  { %v7080_v61 = vpack.c.bf16 %v1105_v13, %v1102_v12  ;;  %v7089_v0 = vpack.c.bf16 %v1159_v26, %v1156_v25  ;;  %v1168_v1 = vand.u32 4294901760, %v7066_v52  ;;  %vm81_vm5 = vcmask 253952  }
  0x2b   :  { %v7077_v58 = vsub.f32 %v100_v22, %v1111_v35  ;;  %vm2977_vm6 = vcmask 261120  }
  0x2e   :  { %v6654_v33 = vpop.eup %6653 }
  0x2f   :  { %v130_v34 = vadd.f32 1.0, %v6654_v33  ;;  %v7036_v33 = vsub.f32 %v6981_v3, %v1105_v13  ;;  %v103_v3 = vld [vmem:[%s8345_s13 + $0x40] sm:$0xff] }
  0x31   :  { %6655 = vrcp.f32 %v130_v34  ;;  %v1108_v34 = vand.u32 4294901760, %v99_v21  ;;  %v6136_v51 = vpack.c.bf16 %v7036_v33, %v7033_v29 }
  0x3b   :  { %v6656_v40 = vpop.eup %6655 }
  0x3c   :  { %v135_v42 = vsel %vm133_vm2, %v6656_v40, 0  ;;  %v1162_v40 = vand.u32 4294901760, %v117_v27 }
  0x3d   :  { %v6911_v45 = vand.u32 4294901760, %v135_v42 }
  0x3e   :  { %v7082_v62 = vsub.f32 %v117_v27, %v1162_v40  ;;  %v1174_v27 = vand.u32 4294901760, %v7102_v8 }
  0x3f   :  { %303 = vmatmul.mubr.f32.vlgmr.msra.gmra.mrb[0].mxu0 %v6911_v45  ;;  %v207_v46 = vsub.f32 %v135_v42, %v6911_v45  ;;  %v1165_v42 = vand.u32 4294901760, %v118_v28 }
  0x40   :  { %6053 = vmatpush1.bf16.msra.mxu0 %v6906_v43  ;;  %381 = vmatprep.mubr.f32.mxu0 %v8349_v7 }
  0x41   :  { %6055 = vmatprep.subr.bf16.mxu0 %v6864_v10  ;;  %v208_v49 = vand.u32 4294901760, %v207_v46  ;;  %v7084_v63 = vsub.f32 %v118_v28, %v1165_v42  ;;  %v7120_v22 = vpack.c.bf16 %v1165_v42, %v1162_v40 }
  0x43   :  { %v209_v50 = vsub.f32 %v207_v46, %v208_v49  ;;  %8454 = vst [vmem:[#allocation25_spill] sm:$0xff] %v7120_v22 }
  0x45   :  { %v210_v54 = vand.u32 4294901760, %v209_v50  ;;  %v7059_v50 = vpack.c.bf16 %v1153_v11, %v1150_v9  ;;  %v7107_v9 = vld [vmem:[%s8345_s13 + $0xd8] sm:$0xff] }
  0x46   :  { %v1177_v28 = vand.u32 4294901760, %v7107_v9 }
  0x47   :  { %384 = vmatmul.mubr.f32.vlgmr.msra.gmra.mrb[0].mxu0 %v207_v46  ;;  %211 = vmatmul.mubr.f32.vlgmr.msra.gmra.mrb[0].mxu1 %v210_v54  ;;  %v102_v46 = vld [vmem:[%s8345_s13 + $0x38] sm:$0xff]  ;;  %v7071_v54 = vld [vmem:[%s8345_s13 + $0xc8] sm:$0xff] }
  0x48   :  { %6057 = vmatpush1.bf16.msra.mxu0 %v6868_v14  ;;  %458 = vmatprep.mubr.f32.mxu0 %v8349_v7  ;;  %v1117_v60 = vand.u32 4294901760, %v102_v46  ;;  %v1171_v2 = vand.u32 4294901760, %v7071_v54 }
  0x49   :  { %6059 = vmatprep.subr.bf16.mxu0 %v6927_v53  ;;  %5917 = vmatpush3.msra.mxu1 %v6898_v39 }
  0x4a   :  { %5918 = vmatprep.mubr.msk.f32.mxu1 %vm6752_vm3, %v8349_v7  ;;  %5921 = vmatprep.subr.mxu1 %v8349_v7  ;;  %v7113_v13 = vsub.f32 %v102_v46, %v1117_v60  ;;  %v7147_v46 = vsub.f32 %v7107_v9, %v1177_v28  ;;  %v8456_v9 = vmov 0 }
  0x4b   :  { %5919 = vmatmul.mubr.f32.vlgmr.msra.gmra.mrb[2].mxu1 %v6929_v55  ;;  %v125_v55 = vld [vmem:[%s8345_s13 + $0xf0] sm:$0xff] }
  0x4c   :  { %5922 = vmatpush3.msra.mxu1 %v730_v56  ;;  %5923 = vmatprep.mubr.msk.f32.mxu1 %vm6752_vm3, %v8349_v7  ;;  %v7075_v56 = vsub.f32 %v99_v21, %v1108_v34  ;;  %v1123_v21 = vand.u32 4294901760, %v104_v6 }
  0x4d   :  { %5926 = vmatprep.subr.mxu1 %v8349_v7 }
  0x4e   :  { %v6140_v11 = vpack.c.bf16 %v7077_v58, %v7075_v56 }
  0x4f   :  { %462 = vmatmul.mubr.f32.vlgmr.msra.gmra.mrb[0].mxu0 %v208_v49  ;;  %5924 = vmatmul.mubr.f32.vlgmr.msra.gmra.mrb[4].mxu1 %v6896_v38  ;;  %v7057_v49 = vsub.f32 %v116_v17, %v1159_v26  ;;  %v6142_v17 = vpack.c.bf16 %v7084_v63, %v7082_v62  ;;  %v7127_v26 = vsub.f32 %v7071_v54, %v1171_v2  ;;  %v106_v54 = vld [vmem:[%s8345_s13 + $0x58] sm:$0xff] }
  0x50   :  { %6061 = vmatpush1.bf16.msra.mxu0 %v6941_v57  ;;  %544 = vmatprep.mubr.f32.mxu0 %v8349_v7  ;;  %v7218_v57 = vpack.c.bf16 %v1177_v28, %v1174_v27 }
  0x51   :  { %6063 = vmatprep.subr.bf16.mxu0 %v6864_v10  ;;  %5927 = vmatpush3.msra.mxu1 %v6909_v44  ;;  %v101_v44 = vld [vmem:[%s8345_s13 + $0x30] sm:$0xff] }
  0x52   :  { %5928 = vmatprep.mubr.msk.f32.mxu1 %vm6752_vm3, %v8349_v7  ;;  %5931 = vmatprep.subr.mxu1 %v8349_v7  ;;  %v1114_v59 = vand.u32 4294901760, %v101_v44  ;;  %8461 = vst [vmem:[#allocation30_spill] sm:$0xff] %v7218_v57 }
  0x53   :  { %5929 = vmatmul.mubr.f32.vlgmr.msra.gmra.mrb[6].mxu1 %v6901_v41 }
  0x54   :  { %5932 = vmatpush3.msra.mxu1 %v6898_v39  ;;  %5933 = vmatprep.mubr.msk.f32.mxu1 %vm6752_vm3, %v8349_v7  ;;  %v7111_v12 = vsub.f32 %v101_v44, %v1114_v59  ;;  %v7138_v40 = vpack.c.bf16 %v1117_v60, %v1114_v59  ;;  %v7144_v44 = vsub.f32 %v7102_v8, %v1174_v27  ;;  %v1129_v60 = vand.u32 4294901760, %v106_v54 }
  0x55   :  { %5936 = vmatprep.subr.mxu1 %v8349_v7  ;;  %v1329_v27 = vand.u32 4294901760, %v6988_v5 }
  0x56   :  { %8455 = vst [vmem:[#allocation26_spill] sm:$0xff] %v7138_v40  ;;  %v7165_v8 = vsub.f32 %v106_v54, %v1129_v60 }
  0x57   :  { %546 = vmatmul.mubr.f32.vlgmr.msra.gmra.mrb[0].mxu0 %v6911_v45  ;;  %5934 = vmatmul.mubr.f32.vlgmr.msra.gmra.mrb[8].mxu1 %v6916_v47 }
  0x58   :  { %6065 = vmatpush1.bf16.msra.mxu0 %v6868_v14  ;;  %620 = vmatprep.mubr.f32.mxu0 %v8349_v7 }
  0x59   :  { %5937 = vmatpush3.msra.mxu1 %v728_v48  ;;  %5938 = vmatprep.mubr.msk.f32.mxu1 %vm6752_vm3, %v8349_v7  ;;  %v7055_v48 = vsub.f32 %v115_v16, %v1156_v25  ;;  %v7115_v16 = vpack.c.bf16 %v1111_v35, %v1108_v34  ;;  %v7124_v25 = vsub.f32 %v7066_v52, %v1168_v1  ;;  %v105_v52 = vld [vmem:[%s8345_s13 + $0x50] sm:$0xff] }
  0x5a   :  { %5941 = vmatprep.subr.mxu1 %v8349_v7  ;;  %6067 = vmatprep.subr.bf16.mxu0 %v6993_v15  ;;  %v6144_v34 = vpack.c.bf16 %v7113_v13, %v7111_v12  ;;  %v1126_v59 = vand.u32 4294901760, %v105_v52 }
  0x5b   :  { %5939 = vmatmul.mubr.f32.vlgmr.msra.gmra.mrb[10].mxu1 %v6896_v38  ;;  %8453 = vst [vmem:[#allocation24_spill] sm:$0xff] %v7115_v16  ;;  %v6146_v42 = vpack.c.bf16 %v7127_v26, %v7124_v25 }
  0x5c   :  { %5942 = vmatpush3.msra.mxu1 %v6898_v39  ;;  %5943 = vmatprep.mubr.msk.f32.mxu1 %vm6752_vm3, %v8349_v7  ;;  %v6134_v39 = vpack.c.bf16 %v7023_v24, %v7021_v23  ;;  %v7220_v31 = vpack.c.bf16 %v1129_v60, %v1126_v59 }
  0x5d   :  { %6131 = vmatprep.subr.bf16.mxu1 %v6130_v18  ;;  %v1120_v18 = vand.u32 4294901760, %v103_v3 }
  0x5e   :  { %8462 = vst [vmem:[#allocation31_spill] sm:$0xff] %v7220_v31 }
  0x5f   :  { %622 = vmatmul.mubr.f32.vlgmr.msra.gmra.mrb[0].mxu0 %v6911_v45  ;;  %5944 = vmatmul.mubr.f32.vlgmr.msra.gmra.mrb[12].mxu1 %v6896_v38  ;;  %v6138_v45 = vpack.c.bf16 %v7057_v49, %v7055_v48  ;;  %v7134_v35 = vsub.f32 %v103_v3, %v1120_v18  ;;  %v8351_v3 = vlaneseq  ;;  %v7194_v47 = vpack.c.bf16 %v1123_v21, %v1120_v18 }
  0x60   :  { %6133 = vmatpush3.bf16.msra.mxu1 %v6132_v36  ;;  %6069 = vmatpush3.bf16.msra.mxu0 %v7045_v37  ;;  %v7136_v36 = vsub.f32 %v104_v6, %v1123_v21  ;;  %v7163_v6 = vsub.f32 %v105_v52, %v1126_v59  ;;  %v108_v52 = vld [vmem:[%s8345_s13 + $0x68] sm:$0xff]  ;;  %v109_v21 = vld [vmem:[%s8345_s13 + $0x70] sm:$0xff] }
  0x61   :  { %6135 = vmatprep.subr.bf16.mxu1 %v6134_v39  ;;  %6071 = vmatprep.subr.bf16.mxu0 %v7059_v50  ;;  %vm7168_vm4 = vcmp.lt.s32.totalorder %v8351_v3, 256  ;;  %8460 = vst [vmem:[#allocation29_spill] sm:$0xff] %v7194_v47 }
  0x62   :  { %v6148_v39 = vpack.c.bf16 %v7136_v36, %v7134_v35  ;;  %v8457_v9 = vsel %vm7168_vm4, 4294967295, %v8456_v9 }
  0x63   :  { %8458 = vst [vmem:[#allocation27_spill] sm:$0xff] %v8457_v9  ;;  %v126_v9 = vld [vmem:[%s8345_s13 + $0xf8] sm:$0xff] }
  0x64   :  { %6137 = vmatpush3.bf16.msra.mxu1 %v6136_v51  ;;  %6073 = vmatpush3.bf16.msra.mxu0 %v7080_v61  ;;  %v6150_v51 = vpack.c.bf16 %v7147_v46, %v7144_v44  ;;  %v1189_v18 = vand.u32 4294901760, %v126_v9 }
  0x65   :  { %6139 = vmatprep.subr.bf16.mxu1 %v6138_v45  ;;  %6075 = vmatprep.subr.bf16.mxu0 %v7089_v0  ;;  %v74_v45 = vld [vmem:[%s8335_s3] sm:$0x3] }
  0x66   :  { %79 = vst.msk [vmem:[#allocation3] sm:$0x3] %vm7168_vm4, %v74_v45  ;;  %v1135_v45 = vand.u32 4294901760, %v108_v52  ;;  %v1426_v43 = vsub.f32 %v126_v9, %v1189_v18  ;;  %v1330_v9 = vsub.f32 %v6988_v5, %v1329_v27 }
  0x68   :  { %6141 = vmatpush3.bf16.msra.mxu1 %v6140_v11  ;;  %6077 = vmatpush3.bf16.msra.mxu0 %v7115_v16  ;;  %v6152_v11 = vpack.c.bf16 %v7165_v8, %v7163_v6  ;;  %v7198_v38 = vsub.f32 %v108_v52, %v1135_v45 }
  0x69   :  { %6143 = vmatprep.subr.bf16.mxu1 %v6142_v17  ;;  %6079 = vmatprep.subr.bf16.mxu0 %v7120_v22  ;;  %v123_v17 = vld [vmem:[%s8345_s13 + $0xe0] sm:$0xff] }
  0x6c   :  { %6145 = vmatpush3.bf16.msra.mxu1 %v6144_v34  ;;  %6081 = vmatpush3.bf16.msra.mxu0 %v7138_v40  ;;  %v124_v34 = vld [vmem:[%s8345_s13 + $0xe8] sm:$0xff] }
  0x6d   :  { %6147 = vmatprep.subr.bf16.mxu1 %v6146_v42  ;;  %v1180_v42 = vand.u32 4294901760, %v123_v17 }
  0x6f   :  { %v7190_v7 = vsub.f32 %v123_v17, %v1180_v42  ;;  %v110_v17 = vld [vmem:[%s8345_s13 + $0x78] sm:$0xff] }
  0x70   :  { %6149 = vmatpush3.bf16.msra.mxu1 %v6148_v39  ;;  %v1183_v39 = vand.u32 4294901760, %v124_v34  ;;  %v1141_v52 = vand.u32 4294901760, %v110_v17 }
  0x71   :  { %6151 = vmatprep.subr.bf16.mxu1 %v6150_v51  ;;  %v107_v51 = vld [vmem:[%s8345_s13 + $0x60] sm:$0xff] }
  0x72   :  { %v1132_v54 = vand.u32 4294901760, %v107_v51  ;;  %v7192_v3 = vsub.f32 %v124_v34, %v1183_v39  ;;  %v7224_v22 = vpack.c.bf16 %v1183_v39, %v1180_v42 }
  0x74   :  { %6153 = vmatpush3.bf16.msra.mxu1 %v6152_v11  ;;  %v7188_v11 = vpack.c.bf16 %v1171_v2, %v1168_v1  ;;  %v7196_v41 = vsub.f32 %v107_v51, %v1132_v54  ;;  %v6154_v1 = vpack.c.bf16 %v7192_v3, %v7190_v7  ;;  %v1186_v2 = vand.u32 4294901760, %v125_v55  ;;  %8463 = vst [vmem:[#allocation32_spill] sm:$0xff] %v7224_v22 }
  0x75   :  { %v1138_v51 = vand.u32 4294901760, %v109_v21 }
  0x76   :  { %8459 = vst [vmem:[#allocation28_spill] sm:$0xff] %v7188_v11  ;;  %6083 = vmatprep.subr.bf16.mxu0 %v7188_v11  ;;  %v6156_v34 = vpack.c.bf16 %v7198_v38, %v7196_v41  ;;  %6155 = vmatprep.subr.bf16.mxu1 %v6154_v1  ;;  %v1419_v53 = vsub.f32 %v125_v55, %v1186_v2  ;;  %v1322_v1 = vand.u32 4294901760, %v6986_v4  ;;  %v1294_v5 = vand.u32 4294901760, %v7196_v41 }
  0x77   :  { %6085 = vmatpush3.bf16.msra.mxu0 %v7194_v47  ;;  %v1307_v32 = vsub.f32 %v109_v21, %v1138_v51  ;;  %v1314_v11 = vsub.f32 %v110_v17, %v1141_v52  ;;  %v7228_v55 = vpack.c.bf16 %v1135_v45, %v1132_v54  ;;  %v7232_v59 = vpack.c.bf16 %v1189_v18, %v1186_v2 }
  0x78   :  { %6157 = vmatpush3.bf16.msra.mxu1 %v6156_v34  ;;  %6087 = vmatprep.subr.bf16.mxu0 %v7218_v57  ;;  %v6158_v40 = vpack.c.bf16 %v1426_v43, %v1419_v53  ;;  %v6194_v28 = vpack.c.bf16 %v1329_v27, %v1322_v1  ;;  %v1323_v60 = vsub.f32 %v6986_v4, %v1322_v1  ;;  %v1280_v54 = vand.u32 4294901760, %v7163_v6 }
  0x79   :  { %v6160_v47 = vpack.c.bf16 %v1314_v11, %v1307_v32  ;;  %8464 = vst [vmem:[#allocation33_spill] sm:$0xff] %v7228_v55  ;;  %8465 = vst [vmem:[#allocation34_spill] sm:$0xff] %v7232_v59  ;;  %v1287_v45 = vand.u32 4294901760, %v7165_v8  ;;  %v1406_v4 = vand.u32 4294901760, %v7190_v7  ;;  %v1413_v18 = vand.u32 4294901760, %v7192_v3 }
  0x7a   :  { %6159 = vmatprep.subr.bf16.mxu1 %v6158_v40  ;;  %v7235_v40 = vpack.c.bf16 %v1141_v52, %v1138_v51  ;;  %v1324_v42 = vand.u32 4294901760, %v1323_v60  ;;  %v1301_v21 = vand.u32 4294901760, %v7198_v38  ;;  %v1281_v34 = vsub.f32 %v7163_v6, %v1280_v54 }
  0x7b   :  { %6089 = vmatpush3.bf16.msra.mxu0 %v7220_v31  ;;  %v7242_v2 = vpack.c.bf16 %v1287_v45, %v1280_v54  ;;  %v7248_v17 = vpack.c.bf16 %v1413_v18, %v1406_v4  ;;  %v1288_v52 = vsub.f32 %v7165_v8, %v1287_v45  ;;  %v1420_v27 = vand.u32 4294901760, %v1419_v53 }
  0x7c   :  { %6161 = vmatpush3.bf16.msra.mxu1 %v6160_v47  ;;  %6091 = vmatprep.subr.bf16.mxu0 %v7224_v22  ;;  %8466 = vst [vmem:[#allocation35_spill] sm:$0xff] %v7235_v40  ;;  %v1331_v47 = vand.u32 4294901760, %v1330_v9  ;;  %v7251_v51 = vpack.c.bf16 %v1301_v21, %v1294_v5  ;;  %v1282_v1 = vand.u32 4294901760, %v1281_v34  ;;  %v1308_v9 = vand.u32 4294901760, %v1307_v32 }
  0x7d   :  { %6195 = vmatprep.subr.bf16.mxu1 %v6194_v28  ;;  %v1427_v28 = vand.u32 4294901760, %v1426_v43  ;;  %v1289_v60 = vand.u32 4294901760, %v1288_v52  ;;  %v1302_v8 = vsub.f32 %v7198_v38, %v1301_v21  ;;  %v1421_v52 = vsub.f32 %v1419_v53, %v1420_v27 }
  0x7e   :  { %v6098_v39 = vpack.c.bf16 %v1331_v47, %v1324_v42  ;;  %v1315_v42 = vand.u32 4294901760, %v1314_v11  ;;  %v1407_v47 = vsub.f32 %v7190_v7, %v1406_v4  ;;  %v1309_v57 = vsub.f32 %v1307_v32, %v1308_v9 }
  0x7f   :  { %6093 = vmatpush3.bf16.msra.mxu0 %v7228_v55  ;;  %v7259_v55 = vpack.c.bf16 %v1289_v60, %v1282_v1  ;;  %v1428_v22 = vsub.f32 %v1426_v43, %v1427_v28  ;;  %v1303_v31 = vand.u32 4294901760, %v1302_v8  ;;  %v1422_v16 = vand.u32 4294901760, %v1421_v52 }
  0x80   :  { %6095 = vmatprep.subr.bf16.mxu0 %v7232_v59  ;;  %v1295_v59 = vsub.f32 %v7196_v41, %v1294_v5  ;;  %v7261_v6 = vpack.c.bf16 %v1315_v42, %v1308_v9  ;;  %v1408_v54 = vand.u32 4294901760, %v1407_v47  ;;  %v1316_v7 = vsub.f32 %v1314_v11, %v1315_v42  ;;  %v84_v47 = vld [vmem:[#allocation3] sm:$0x3] }
  0x81   :  { %v1310_v41 = vand.u32 4294901760, %v1309_v57  ;;  %v8467_v9 = vlaneseq }
  0x82   :  { %v1296_v34 = vand.u32 4294901760, %v1295_v59  ;;  %v1317_v5 = vand.u32 4294901760, %v1316_v7 }
  0x83   :  { %6097 = vmatpush3.bf16.msra.mxu0 %v7235_v40  ;;  %v1414_v40 = vsub.f32 %v7192_v3, %v1413_v18  ;;  %v1429_v3 = vand.u32 4294901760, %v1428_v22  ;;  %v7273_v22 = vshrl.u32 %v8467_v9, 7 }
  0x84   :  { %6099 = vmatprep.subr.bf16.mxu0 %v6098_v39  ;;  %v7255_v39 = vpack.c.bf16 %v1427_v28, %v1420_v27  ;;  %v7266_v18 = vpack.c.bf16 %v1303_v31, %v1296_v34  ;;  %v7270_v60 = vpack.c.bf16 %v1317_v5, %v1310_v41  ;;  %v1210_v41 = vand.u32 4294901760, %v7007_v19 }
  0x85   :  { %v1415_v45 = vand.u32 4294901760, %v1414_v40  ;;  %v7268_v1 = vpack.c.bf16 %v1429_v3, %v1422_v16  ;;  %v8387_v16 = vsub.s32 0, %v7273_v22  ;;  %v1217_v5 = vand.u32 4294901760, %v7009_v20 }
  0x87   :  { %v7264_v4 = vpack.c.bf16 %v1415_v45, %v1408_v54  ;;  %v8386_v54 = vsub.s32 1, %v7273_v22  ;;  %v632_v52 = vrot.slane %v84_v47, %v8387_v16 }
  0x89   :  { %v636_v3 = vrot.slane %v84_v47, %v8386_v54  ;;  %v1224_v47 = vand.u32 4294901760, %v7033_v29 }
 0x11a   :  { %v212_v38 = vpop.f32.mrb[0].mxu1 }
 0x11b   :  { %v214_v40 = vpop.f32.mrb[1].mxu1 }
 0x11e   :  { %v721_v59 = vpop.f32.mrb[2].mxu1 }
 0x11f   :  { %v5920_v53 = vpop.f32.mrb[3].mxu1 }
 0x122   :  { %v797_v43 = vpop.f32.mrb[4].mxu1 }
 0x123   :  { %v798_v21 = vadd.f32 %v797_v43, %v721_v59  ;;  %v5925_v32 = vpop.f32.mrb[5].mxu1 }
 0x126   :  { %v871_v11 = vpop.f32.mrb[6].mxu1 }
 0x127   :  { %v872_v27 = vadd.f32 %v871_v11, %v798_v21  ;;  %v5930_v28 = vpop.f32.mrb[7].mxu1 }
 0x128   :  { %v1218_v28 = vsub.f32 %v7009_v20, %v1217_v5 }
 0x12a   :  { %v945_v31 = vpop.f32.mrb[8].mxu1 }
 0x12b   :  { %v946_v57 = vadd.f32 %v945_v31, %v872_v27  ;;  %v5935_v42 = vpop.f32.mrb[9].mxu1  ;;  %v1211_v27 = vsub.f32 %v7007_v19, %v1210_v41  ;;  %v1336_v31 = vand.u32 4294901760, %v7021_v23 }
 0x12d   :  { %v1337_v19 = vsub.f32 %v7021_v23, %v1336_v31  ;;  %v1225_v23 = vsub.f32 %v7033_v29, %v1224_v47 }
 0x12e   :  { %v1019_v8 = vpop.f32.mrb[10].mxu1 }
 0x12f   :  { %v1020_v45 = vadd.f32 %v1019_v8, %v946_v57  ;;  %v5940_v34 = vpop.f32.mrb[11].mxu1  ;;  %v1343_v57 = vand.u32 4294901760, %v7023_v24  ;;  %v1231_v8 = vand.u32 4294901760, %v7036_v33 }
 0x130   :  { %v1212_v34 = vand.u32 4294901760, %v1211_v27  ;;  %v1238_v27 = vand.u32 4294901760, %v7075_v56 }
 0x132   :  { %v623_v7 = vpop.f32.mrb[0].mxu0  ;;  %v1091_v59 = vpop.f32.mrb[12].mxu1 }
 0x133   :  { %v6582_v53 = vadd.f32 %v623_v7, %v212_v38  ;;  %v625_v43 = vpop.f32.mrb[1].mxu0  ;;  %v7283_v21 = vadd.f32 %v1091_v59, %v1020_v45  ;;  %v5945_v32 = vpop.f32.mrb[13].mxu1  ;;  %v6198_v7 = vpack.c.bf16 %v1343_v57, %v1336_v31  ;;  %v1344_v59 = vsub.f32 %v7023_v24, %v1343_v57 }
 0x134   :  { %v6583_v11 = vadd.f32 %v625_v43, %v214_v40  ;;  %v1219_v40 = vand.u32 4294901760, %v1218_v28  ;;  %v1350_v43 = vand.u32 4294901760, %v7055_v48  ;;  %v1357_v32 = vand.u32 4294901760, %v7057_v49 }
 0x135   :  { %v639_v9 = vmul.f32 %v6582_v53, %v632_v52  ;;  %v6196_v52 = vpack.c.bf16 %v1217_v5, %v1210_v41  ;;  %v6200_v53 = vpack.c.bf16 %v1231_v8, %v1224_v47  ;;  %v1232_v28 = vsub.f32 %v7036_v33, %v1231_v8 }
 0x136   :  { %v640_v42 = vmul.f32 %v6583_v11, %v636_v3  ;;  %v6100_v41 = vpack.c.bf16 %v1219_v40, %v1212_v34  ;;  %v1245_v5 = vand.u32 4294901760, %v7077_v58  ;;  %v1345_v57 = vand.u32 4294901760, %v1344_v59 }
 0x137   :  { %v7291_v38 = vand.u32 4294901760, %v639_v9  ;;  %v1358_v29 = vsub.f32 %v7057_v49, %v1357_v32  ;;  %v6202_v47 = vpack.c.bf16 %v1357_v32, %v1350_v43  ;;  %v1364_v8 = vand.u32 4294901760, %v7082_v62 }
 0x138   :  { %v7293_v45 = vand.u32 4294901760, %v640_v42  ;;  %v1371_v34 = vand.u32 4294901760, %v7084_v63  ;;  %v1226_v40 = vand.u32 4294901760, %v1225_v23  ;;  %v1239_v59 = vsub.f32 %v7075_v56, %v1238_v27 }
 0x139   :  { %v7297_v20 = vsub.f32 %v639_v9, %v7291_v38  ;;  %v1338_v9 = vand.u32 4294901760, %v1337_v19  ;;  %v1233_v19 = vand.u32 4294901760, %v1232_v28  ;;  %v1365_v54 = vsub.f32 %v7082_v62, %v1364_v8 }
 0x13a   :  { %v7301_v3 = vsub.f32 %v640_v42, %v7293_v45  ;;  %v1351_v42 = vsub.f32 %v7055_v48, %v1350_v43  ;;  %v1246_v48 = vsub.f32 %v7077_v58, %v1245_v5  ;;  %v1372_v16 = vsub.f32 %v7084_v63, %v1371_v34 }
 0x13b   :  { %v8388_v11 = vand.u32 4294901760, %v7297_v20  ;;  %v6102_v43 = vpack.c.bf16 %v1345_v57, %v1338_v9  ;;  %v1259_v23 = vand.u32 4294901760, %v7113_v13  ;;  %v1378_v56 = vand.u32 4294901760, %v7124_v25 }
 0x13c   :  { %1569 = vmatprep.mubr.f32.mxu1 %v7301_v3  ;;  %v8389_v24 = vand.u32 4294901760, %v7301_v3  ;;  %v1352_v32 = vand.u32 4294901760, %v1351_v42  ;;  %v1385_v58 = vand.u32 4294901760, %v7127_v26  ;;  %v6206_v28 = vpack.c.bf16 %v1371_v34, %v1364_v8 }
 0x13d   :  { %1572 = vmatmul.mubr.f32.vlgmr.msra.gmra.mrb[14].mxu1 %v7297_v20  ;;  %v1200_v31 = vsub.f32 %v7297_v20, %v8388_v11  ;;  %v1247_v62 = vand.u32 4294901760, %v1246_v48  ;;  %v6104_v9 = vpack.c.bf16 %v1233_v19, %v1226_v40  ;;  %v1379_v57 = vsub.f32 %v7124_v25, %v1378_v56 }
 0x13e   :  { %6197 = vmatpush3.bf16.msra.mxu1 %v6196_v52  ;;  %1846 = vmatprep.mubr.f32.mxu1 %v7293_v45  ;;  %v1194_v33 = vsub.f32 %v7301_v3, %v8389_v24  ;;  %v1252_v52 = vand.u32 4294901760, %v7111_v12  ;;  %v1359_v24 = vand.u32 4294901760, %v1358_v29  ;;  %v6210_v29 = vpack.c.bf16 %v1385_v58, %v1378_v56 }
 0x13f   :  { %6199 = vmatprep.subr.bf16.mxu1 %v6198_v7  ;;  %v1201_v11 = vand.u32 4294901760, %v1200_v31  ;;  %v6204_v7 = vpack.c.bf16 %v1245_v5, %v1238_v27  ;;  %v1373_v31 = vand.u32 4294901760, %v1372_v16  ;;  %v1260_v27 = vsub.f32 %v7113_v13, %v1259_v23 }
 0x140   :  { %v1195_v49 = vand.u32 4294901760, %v1194_v33  ;;  %v1240_v33 = vand.u32 4294901760, %v1239_v59  ;;  %v1253_v63 = vsub.f32 %v7111_v12, %v1252_v52  ;;  %v6106_v5 = vpack.c.bf16 %v1359_v24, %v1352_v32 }
 0x141   :  { %v6208_v42 = vpack.c.bf16 %v1259_v23, %v1252_v52  ;;  %v1273_v12 = vand.u32 4294901760, %v7136_v36  ;;  %v1392_v16 = vand.u32 4294901760, %v7144_v44  ;;  %v1399_v13 = vand.u32 4294901760, %v7147_v46 }
 0x142   :  { %6201 = vmatpush3.bf16.msra.mxu1 %v6200_v53  ;;  %1196 = vmatprep.mubr.f32.mxu0 %v1195_v49  ;;  %v1366_v53 = vand.u32 4294901760, %v1365_v54  ;;  %v1254_v8 = vand.u32 4294901760, %v1253_v63  ;;  %v1261_v24 = vand.u32 4294901760, %v1260_v27  ;;  %v1380_v34 = vand.u32 4294901760, %v1379_v57 }
 0x143   :  { %1202 = vmatmul.mubr.f32.vlgmr.msra.gmra.mrb[2].mxu0 %v1201_v11  ;;  %6203 = vmatprep.subr.bf16.mxu1 %v6202_v47  ;;  %v1386_v11 = vsub.f32 %v7127_v26, %v1385_v58  ;;  %v1266_v47 = vand.u32 4294901760, %v7134_v35  ;;  %v1274_v26 = vsub.f32 %v7136_v36, %v1273_v12  ;;  %v1393_v19 = vsub.f32 %v7144_v44, %v1392_v16 }
 0x144   :  { %6101 = vmatpush3.bf16.msra.mxu0 %v6100_v41  ;;  %1432 = vmatprep.mubr.f32.mxu0 %v7293_v45  ;;  %v6108_v41 = vpack.c.bf16 %v1247_v62, %v1240_v33  ;;  %v6110_v54 = vpack.c.bf16 %v1373_v31, %v1366_v53  ;;  %v1400_v59 = vsub.f32 %v7147_v46, %v1399_v13  ;;  %v8468_v46 = vmov 0.0  }
 0x145   :  { %6103 = vmatprep.subr.bf16.mxu0 %v6102_v43  ;;  %v1267_v25 = vsub.f32 %v7134_v35, %v1266_v47  ;;  %v1387_v40 = vand.u32 4294901760, %v1386_v11  ;;  %v6212_v48 = vpack.c.bf16 %v1273_v12, %v1266_v47  ;;  %v6214_v49 = vpack.c.bf16 %v1399_v13, %v1392_v16 }
 0x146   :  { %6205 = vmatpush3.bf16.msra.mxu1 %v6204_v7  ;;  %v6112_v52 = vpack.c.bf16 %v1261_v24, %v1254_v8  ;;  %v1275_v32 = vand.u32 4294901760, %v1274_v26  ;;  %v1394_v35 = vand.u32 4294901760, %v1393_v19  ;;  %v1401_v23 = vand.u32 4294901760, %v1400_v59 }
 0x147   :  { %6207 = vmatprep.subr.bf16.mxu1 %v6206_v28  ;;  %v1268_v43 = vand.u32 4294901760, %v1267_v25  ;;  %v6114_v7 = vpack.c.bf16 %v1387_v40, %v1380_v34  ;;  %v8481_v56 = vand.u32 4294901760, %v7297_v20 }
 0x148   :  { %6105 = vmatpush3.bf16.msra.mxu0 %v6104_v9  ;;  %v6118_v44 = vpack.c.bf16 %v1401_v23, %v1394_v35 }
 0x149   :  { %6107 = vmatprep.subr.bf16.mxu0 %v6106_v5  ;;  %v6116_v36 = vpack.c.bf16 %v1275_v32, %v1268_v43  ;;  %v80_v32 = vld [vmem:[%s8336_s4] sm:$0x1]  ;;  %s641_s4 = ssub.f32 1.0, %s7445_s2 }
 0x14a   :  { %6209 = vmatpush3.bf16.msra.mxu1 %v6208_v42  ;;  %82 = vst.msk [vmem:[#allocation4] sm:$0x1] %vm81_vm5, %v80_v32 }
 0x14b   :  { %6211 = vmatprep.subr.bf16.mxu1 %v6210_v29 }
 0x14c   :  { %6109 = vmatpush3.bf16.msra.mxu0 %v6108_v41 }
 0x14d   :  { %6111 = vmatprep.subr.bf16.mxu0 %v6110_v54 }
 0x14e   :  { %6213 = vmatpush3.bf16.msra.mxu1 %v6212_v48 }
 0x14f   :  { %6215 = vmatprep.subr.bf16.mxu1 %v6214_v49 }
 0x150   :  { %6113 = vmatpush3.bf16.msra.mxu0 %v6112_v52 }
 0x151   :  { %6115 = vmatprep.subr.bf16.mxu0 %v6114_v7 }
 0x152   :  { %6217 = vmatpush3.bf16.msra.mxu1 %v7242_v2  ;;  %v8470_v2 = vld [vmem:[#allocation24_spill] sm:$0xff] }
 0x153   :  { %6219 = vmatprep.subr.bf16.mxu1 %v7248_v17  ;;  %v8472_v17 = vld [vmem:[#allocation26_spill] sm:$0xff] }
 0x154   :  { %6117 = vmatpush3.bf16.msra.mxu0 %v6116_v36 }
 0x155   :  { %6119 = vmatprep.subr.bf16.mxu0 %v6118_v44 }
 0x156   :  { %6221 = vmatpush3.bf16.msra.mxu1 %v7251_v51  ;;  %v8473_v51 = vld [vmem:[#allocation28_spill] sm:$0xff] }
 0x157   :  { %6223 = vmatprep.subr.bf16.mxu1 %v7255_v39  ;;  %v8474_v39 = vld [vmem:[#allocation29_spill] sm:$0xff] }
 0x158   :  { %6121 = vmatpush3.bf16.msra.mxu0 %v7259_v55  ;;  %v8469_v55 = vand.u32 4294901760, %v7301_v3  ;;  %v8480_v3 = vld [vmem:[#allocation35_spill] sm:$0xff] }
 0x159   :  { %6123 = vmatprep.subr.bf16.mxu0 %v7264_v4  ;;  %v8476_v4 = vld [vmem:[#allocation31_spill] sm:$0xff] }
 0x15a   :  { %6225 = vmatpush3.bf16.msra.mxu1 %v7261_v6  ;;  %v8475_v6 = vld [vmem:[#allocation30_spill] sm:$0xff] }
 0x15b   :  { %6259 = vmatprep.subr.bf16.mxu1 %v6864_v10 }
 0x15c   :  { %6125 = vmatpush3.bf16.msra.mxu0 %v7266_v18  ;;  %v8477_v18 = vld [vmem:[#allocation32_spill] sm:$0xff] }
 0x15d   :  { %1848 = vmatmul.mubr.f32.vlgmr.msra.gmra.mrb[16].mxu1 %v7291_v38  ;;  %6127 = vmatprep.subr.bf16.mxu0 %v7268_v1  ;;  %v8478_v1 = vld [vmem:[#allocation33_spill] sm:$0xff] }
 0x15e   :  { %6261 = vmatpush1.bf16.msra.mxu1 %v6868_v14  ;;  %2037 = vmatprep.mubr.f32.mxu1 %v8468_v46 }
 0x15f   :  { %6263 = vmatprep.subr.bf16.mxu1 %v6881_v30  ;;  %v8471_v30 = vld [vmem:[#allocation25_spill] sm:$0xff] }
 0x160   :  { %6129 = vmatpush3.bf16.msra.mxu0 %v7270_v60  ;;  %v8479_v60 = vld [vmem:[#allocation34_spill] sm:$0xff] }
 0x161   :  { %6163 = vmatprep.subr.bf16.mxu0 %v6993_v15 }
 0x163   :  { %1434 = vmatmul.mubr.f32.vlgmr.msra.gmra.mrb[4].mxu0 %v7291_v38 }
 0x164   :  { %6165 = vmatpush3.bf16.msra.mxu0 %v7045_v37  ;;  %1676 = vmatprep.mubr.f32.mxu0 %v8469_v55 }
 0x165   :  { %6167 = vmatprep.subr.bf16.mxu0 %v7059_v50 }
 0x168   :  { %6169 = vmatpush3.bf16.msra.mxu0 %v7080_v61 }
 0x169   :  { %6171 = vmatprep.subr.bf16.mxu0 %v7089_v0 }
 0x16c   :  { %6173 = vmatpush3.bf16.msra.mxu0 %v8470_v2 }
 0x16d   :  { %6175 = vmatprep.subr.bf16.mxu0 %v8471_v30 }
 0x170   :  { %6177 = vmatpush3.bf16.msra.mxu0 %v8472_v17 }
 0x171   :  { %6179 = vmatprep.subr.bf16.mxu0 %v8473_v51 }
 0x174   :  { %6181 = vmatpush3.bf16.msra.mxu0 %v8474_v39 }
 0x175   :  { %6183 = vmatprep.subr.bf16.mxu0 %v8475_v6 }
 0x178   :  { %6185 = vmatpush3.bf16.msra.mxu0 %v8476_v4 }
 0x179   :  { %6187 = vmatprep.subr.bf16.mxu0 %v8477_v18 }
 0x17c   :  { %6189 = vmatpush3.bf16.msra.mxu0 %v8478_v1 }
 0x17d   :  { %6191 = vmatprep.subr.bf16.mxu0 %v8479_v60 }
 0x180   :  { %6193 = vmatpush3.bf16.msra.mxu0 %v8480_v3 }
 0x181   :  { %6227 = vmatprep.subr.bf16.mxu0 %v6993_v15  ;;  %v92_v15 = vld [vmem:[%s8344_s12 + $0x8] sm:$0xff] }
 0x183   :  { %1680 = vmatmul.mubr.f32.vlgmr.msra.gmra.mrb[6].mxu0 %v8481_v56 }
 0x184   :  { %6229 = vmatpush3.bf16.msra.mxu0 %v7045_v37  ;;  %1950 = vmatprep.mubr.f32.mxu0 %v7293_v45  ;;  %v94_v37 = vld [vmem:[%s8344_s12 + $0x18] sm:$0xff] }
 0x185   :  { %6231 = vmatprep.subr.bf16.mxu0 %v7059_v50  ;;  %v91_v50 = vld [vmem:[%s8344_s12] sm:$0xff]  ;;  %v2464_v45 = vand.u32 4294901760, %v94_v37 }
 0x186   :  { %v2462_v20 = vand.u32 4294901760, %v91_v50 }
 0x187   :  { %v7425_v42 = vsub.f32 %v94_v37, %v2464_v45 }
 0x188   :  { %6233 = vmatpush3.bf16.msra.mxu0 %v7080_v61  ;;  %v7416_v9 = vsub.f32 %v91_v50, %v2462_v20 }
 0x189   :  { %6235 = vmatprep.subr.bf16.mxu0 %v7089_v0  ;;  %v2460_v0 = vand.u32 4294901760, %v92_v15  ;;  %v2554_v47 = vand.u32 4294901760, %v7425_v42 }
 0x18a   :  { %v2548_v12 = vand.u32 4294901760, %v7416_v9 }
 0x18b   :  { %v7412_v62 = vpack.c.bf16 %v2464_v45, %v2460_v0  ;;  %v7423_v11 = vsub.f32 %v92_v15, %v2460_v0  ;;  %v2555_v16 = vsub.f32 %v7425_v42, %v2554_v47 }
 0x18c   :  { %6237 = vmatpush3.bf16.msra.mxu0 %v8470_v2  ;;  %v2549_v13 = vsub.f32 %v7416_v9, %v2548_v12 }
 0x18d   :  { %6239 = vmatprep.subr.bf16.mxu0 %v8471_v30  ;;  %v2542_v29 = vand.u32 4294901760, %v7423_v11  ;;  %v2556_v24 = vand.u32 4294901760, %v2555_v16  ;;  %v6290_v19 = vpack.c.bf16 %v7425_v42, %v7423_v11  ;;  %v8486_v42 = vld [vmem:[#allocation21_spill] sm:$0xff]  ;;  %v2971_v16 = vld [vmem:[%s8340_s8 + $0x10] sm:$0xff] }
 0x18e   :  { %v2550_v25 = vand.u32 4294901760, %v2549_v13 }
 0x18f   :  { %v2543_v8 = vsub.f32 %v7423_v11, %v2542_v29  ;;  %v6298_v44 = vpack.c.bf16 %v2554_v47, %v2542_v29  ;;  %v2970_v11 = vld [vmem:[%s8340_s8 + $0x8] sm:$0xff]  ;;  %v2972_v29 = vld [vmem:[%s8340_s8 + $0x18] sm:$0xff] }
 0x190   :  { %6241 = vmatpush3.bf16.msra.mxu0 %v8472_v17  ;;  %v2981_v47 = vand.u32 4294901760, %v2970_v11 }
 0x191   :  { %6243 = vmatprep.subr.bf16.mxu0 %v8473_v51  ;;  %v2544_v54 = vand.u32 4294901760, %v2543_v8  ;;  %v2985_v8 = vand.u32 4294901760, %v2972_v29 }
 0x193   :  { %v6286_v34 = vpack.c.bf16 %v2556_v24, %v2544_v54  ;;  %v2976_v54 = vld [vmem:[%s8340_s8 + $0x38] sm:$0xff]  ;;  %v7495_v24 = vsub.f32 %v2970_v11, %v2981_v47 }
 0x194   :  { %6245 = vmatpush3.bf16.msra.mxu0 %v8474_v39 }
 0x195   :  { %6247 = vmatprep.subr.bf16.mxu0 %v8475_v6 }
 0x198   :  { %6249 = vmatpush3.bf16.msra.mxu0 %v8476_v4  ;;  %v7448_v4 = vstv %s641_s4  ;;  %s5403_s4 = sshll.u32 %s6756_s21, 4  ;;  %s8285_s4 = int_to_ptr.vmem [resolvable:$true] %s5403_s4 }
 0x199   :  { %6251 = vmatprep.subr.bf16.mxu0 %v8477_v18  ;;  %8482 = vst [vmem:[#allocation24_spill] sm:$0xff] %v7448_v4 }
 0x19c   :  { %6253 = vmatpush3.bf16.msra.mxu0 %v8478_v1 }
 0x19d   :  { %6255 = vmatprep.subr.bf16.mxu0 %v8479_v60  ;;  %v7451_v60 = vstv %s7445_s2 }
 0x1a0   :  { %6257 = vmatpush3.bf16.msra.mxu0 %v8480_v3  ;;  %v6663_v3 = vld [vmem:[#allocation2] sm:$0x1] }
 0x1a1   :  { %6283 = vmatprep.subr.bf16.mxu0 %v7412_v62  ;;  %v643_v56 = vmul.f32 %v6663_v3, %v7448_v4 }
 0x1a3   :  { %1952 = vmatmul.mubr.f32.vlgmr.msra.gmra.mrb[8].mxu0 %v7291_v38  ;;  %v93_v38 = vld [vmem:[%s8344_s12 + $0x10] sm:$0xff] }
 0x1a4   :  { %2528 = vmatprep.mubr.f32.mxu0 %v8468_v46  ;;  %v2466_v28 = vand.u32 4294901760, %v93_v38 }
 0x1a6   :  { %v7414_v63 = vpack.c.bf16 %v2466_v28, %v2462_v20  ;;  %v7418_v53 = vsub.f32 %v93_v38, %v2466_v28 }
 0x1a8   :  { %6285 = vmatpush1.bf16.msra.mxu0 %v7414_v63  ;;  %v2560_v41 = vand.u32 4294901760, %v7418_v53  ;;  %v6292_v59 = vpack.c.bf16 %v7418_v53, %v7416_v9 }
 0x1a9   :  { %6287 = vmatprep.subr.bf16.mxu0 %v6286_v34  ;;  %v2987_v34 = vand.u32 4294901760, %v2971_v16 }
 0x1aa   :  { %v7443_v55 = vpack.c.bf16 %v2560_v41, %v2548_v12  ;;  %v2969_v12 = vld [vmem:[%s8340_s8] sm:$0xff] }
 0x1ab   :  { %v2983_v13 = vand.u32 4294901760, %v2969_v12 }
 0x1ad   :  { %v7523_v32 = vsub.f32 %v2969_v12, %v2983_v13 }
 0x210   :  { %v5556_v61 = vpop.f32.mrb[14].mxu1 }
 0x211   :  { %v5557_v58 = vpop.f32.mrb[15].mxu1 }
 0x212   :  { %v5558_v33 = vadd.f32 %v5557_v58, %v5556_v61 }
 0x216   :  { %v5486_v31 = vpop.f32.mrb[2].mxu0 }
 0x217   :  { %v5487_v27 = vpop.f32.mrb[3].mxu0 }
 0x218   :  { %v5488_v5 = vadd.f32 %v5487_v27, %v5486_v31  ;;  %v8483_v31 = vld [vmem:[#allocation16_spill] sm:$0xff]  ;;  %v8484_v27 = vld [vmem:[#allocation15_spill] sm:$0xff] }
 0x21a   :  { %v1204_v57 = vadd.f32 %v5488_v5, %v7283_v21  ;;  %v2561_v21 = vsub.f32 %v7418_v53, %v2560_v41  ;;  %v85_v5 = vld [vmem:[#allocation4] sm:$0x1] }
 0x21c   :  { %v2562_v26 = vand.u32 4294901760, %v2561_v21  ;;  %v2974_v21 = vld [vmem:[%s8340_s8 + $0x28] sm:$0xff] }
 0x21e   :  { %v6288_v40 = vpack.c.bf16 %v2562_v26, %v2550_v25  ;;  %v8487_v26 = vld [vmem:[#allocation23_spill] sm:$0xff] }
 0x230   :  { %v5626_v48 = vpop.f32.mrb[16].mxu1 }
 0x231   :  { %v5627_v49 = vpop.f32.mrb[17].mxu1 }
 0x232   :  { %v5628_v52 = vadd.f32 %v5627_v49, %v5626_v48  ;;  %v2993_v48 = vand.u32 4294901760, %v2976_v54  ;;  %v2975_v49 = vld [vmem:[%s8340_s8 + $0x30] sm:$0xff] }
 0x236   :  { %v5521_v43 = vpop.f32.mrb[4].mxu0 }
 0x237   :  { %v5522_v7 = vpop.f32.mrb[5].mxu0 }
 0x238   :  { %v5523_v35 = vadd.f32 %v5522_v7, %v5521_v43  ;;  %v7519_v43 = vld [vmem:[%s8342_s10 + $0x88] sm:$0xff] }
 0x23a   :  { %v1436_v23 = vadd.f32 %v5523_v35, %v1204_v57  ;;  %v8485_v57 = vld [vmem:[#allocation19_spill] sm:$0xff] }
 0x23c   :  { %v1574_v36 = vadd.f32 %v5558_v33, %v1436_v23  ;;  %v3067_v23 = vand.u32 4294901760, %v7495_v24 }
 0x256   :  { %v5591_v2 = vpop.f32.mrb[6].mxu0 }
 0x257   :  { %v5592_v30 = vpop.f32.mrb[7].mxu0 }
 0x258   :  { %v5593_v17 = vadd.f32 %v5592_v30, %v5591_v2  ;;  %v8396_v2 = vand.u32 4294901760, %v7519_v43 }
 0x25a   :  { %v1682_v51 = vadd.f32 %v5593_v17, %v1574_v36  ;;  %v7529_v36 = vsub.f32 %v2971_v16, %v2987_v34  ;;  %v7538_v17 = vpack.c.bf16 %v2985_v8, %v2981_v47  ;;  %v7636_v16 = vld [vmem:[%s8342_s10 + $0xa0] sm:$0xff] }
 0x25c   :  { %v1850_v39 = vadd.f32 %v5628_v52, %v1682_v51  ;;  %v7514_v52 = vld [vmem:[%s8342_s10 + $0x80] sm:$0xff] }
 0x276   :  { %v5661_v6 = vpop.f32.mrb[8].mxu0 }
 0x277   :  { %v5662_v18 = vpop.f32.mrb[9].mxu0 }
 0x278   :  { %v5663_v1 = vadd.f32 %v5662_v18, %v5661_v6 }
 0x27a   :  { %v1954_v15 = vadd.f32 %v5663_v1, %v1850_v39  ;;  %v3073_v39 = vand.u32 4294901760, %v7523_v32  ;;  %v3068_v1 = vsub.f32 %v7495_v24, %v3067_v23 }
 0x27c   :  { %v1958_v37 = vmul.f32 %v7451_v60, %v1954_v15  ;;  %v7566_v15 = vld [vmem:[%s8342_s10] sm:$0xff] }
 0x27e   :  { %v1959_v50 = vadd.f32 %v1958_v37, %v643_v56  ;;  %v3085_v56 = vand.u32 4294901760, %v7529_v36  ;;  %v7571_v37 = vld [vmem:[%s8342_s10 + $0x8] sm:$0xff] }
 0x280   :  { %v5441_v61 = vmul.f32 -1.442695, %v1959_v50  ;;  %5386 = vst.msk [vmem:[#allocation2] sm:$0x1] %vm72_vm0, %v1959_v50  ;;  %5394 = vst.msk [vmem:[#allocation8] sm:$0x1] %vm72_vm0, %v1959_v50 }
 0x282   :  { %6657 = vpow2.f32 %v5441_v61  ;;  %v7583_v61 = vld [vmem:[%s8342_s10 + $0x90] sm:$0xff] }
 0x28c   :  { %v6658_v0 = vpop.eup %6657 }
 0x28d   :  { %v1963_v45 = vadd.f32 1.0, %v6658_v0  ;;  %v7588_v0 = vld [vmem:[%s8342_s10 + $0x98] sm:$0xff] }
 0x28e   :  { %v8390_v11 = vand.u32 4294901760, %v7588_v0 }
 0x28f   :  { %6659 = vrcp.f32 %v1963_v45  ;;  %v7591_v45 = vpack.c.bf16 %v2987_v34, %v2983_v13  ;;  %v7641_v13 = vld [vmem:[%s8342_s10 + $0xa8] sm:$0xff] }
 0x290   :  { %6661 = vtanh.f32 %v85_v5 }
 0x299   :  { %v6660_v38 = vpop.eup %6659 }
 0x29a   :  { %v1967_v20 = vsel %vm133_vm2, %v6660_v38, 0  ;;  %v6662_v41 = vpop.eup %6661 }
 0x29b   :  { %v7458_v58 = vand.u32 4294901760, %v1967_v20  ;;  %v2979_v25 = vsel %vm2977_vm6, %v6662_v41, 0 }
 0x29c   :  { %v7525_v7 = vand.u32 4294901760, %v2979_v25 }
 0x29d   :  { %v2039_v28 = vsub.f32 %v1967_v20, %v7458_v58 }
 0x29e   :  { %8488 = vst [vmem:[#allocation25_spill] sm:$0xff] %v7525_v7  ;;  %v7541_v51 = vsub.f32 %v2979_v25, %v7525_v7 }
 0x29f   :  { %v2040_v33 = vand.u32 4294901760, %v2039_v28 }
 0x2a0   :  { %8489 = vst [vmem:[#allocation26_spill] sm:$0xff] %v7541_v51  ;;  %v7596_v20 = vand.u32 4294901760, %v7541_v51 }
 0x2a1   :  { %v2041_v9 = vsub.f32 %v2039_v28, %v2040_v33 }
 0x2a2   :  { %8490 = vst [vmem:[#allocation28_spill] sm:$0xff] %v7596_v20 }
 0x2a3   :  { %v2042_v53 = vand.u32 4294901760, %v2041_v9 }
 0x2a5   :  { %2043 = vmatmul.mubr.f32.vlgmr.msra.gmra.mrb[18].mxu1 %v2042_v53  ;;  %2534 = vmatmul.mubr.f32.vlgmr.msra.gmra.mrb[10].mxu0 %v2042_v53  ;;  %v8395_v53 = vand.u32 4294901760, %v7566_v15 }
 0x2a6   :  { %6265 = vmatpush1.bf16.msra.mxu1 %v8483_v31  ;;  %6289 = vmatpush1.bf16.msra.mxu0 %v6288_v40  ;;  %v7502_v40 = vld [vmem:[%s8340_s8 + $0x20] sm:$0xff]  ;;  %v8392_v31 = vand.u32 4294901760, %v7571_v37 }
 0x2a7   :  { %2133 = vmatprep.mubr.f32.mxu1 %v8468_v46  ;;  %2624 = vmatprep.mubr.f32.mxu0 %v8468_v46  ;;  %v2991_v35 = vand.u32 4294901760, %v7502_v40 }
 0x2a8   :  { %6267 = vmatprep.subr.bf16.mxu1 %v8484_v27  ;;  %6291 = vmatprep.subr.bf16.mxu0 %v6290_v19  ;;  %v7506_v19 = vsub.f32 %v2972_v29, %v2985_v8  ;;  %v3086_v27 = vsub.f32 %v7529_v36, %v3085_v56  ;;  %v7619_v29 = vld [vmem:[%s8342_s10 + $0x18] sm:$0xff]  ;;  %v7631_v8 = vpack.c.bf16 %v8392_v31, %v8395_v53 }
 0x2a9   :  { %v7553_v18 = vsub.f32 %v7502_v40, %v2991_v35  ;;  %v7693_v31 = vld [vmem:[%s8342_s10 + $0xb8] sm:$0xff] }
 0x2ab   :  { %v8405_v9 = vand.u32 4294901760, %v7553_v18 }
 0x2ad   :  { %2135 = vmatmul.mubr.f32.vlgmr.msra.gmra.mrb[18].mxu1 %v7458_v58  ;;  %2626 = vmatmul.mubr.f32.vlgmr.msra.gmra.mrb[10].mxu0 %v7458_v58  ;;  %v3098_v34 = vsub.f32 %v7553_v18, %v8405_v9  ;;  %v6324_v9 = vpack.c.bf16 %v7529_v36, %v7523_v32 }
 0x2ae   :  { %6269 = vmatpush1.bf16.msra.mxu1 %v8485_v57  ;;  %6293 = vmatpush1.bf16.msra.mxu0 %v6292_v59  ;;  %v2989_v59 = vand.u32 4294901760, %v2974_v21  ;;  %v8391_v57 = vand.u32 4294901760, %v7583_v61 }
 0x2af   :  { %2213 = vmatprep.mubr.f32.mxu1 %v8468_v46  ;;  %2704 = vmatprep.mubr.f32.mxu0 %v8468_v46 }
 0x2b0   :  { %6271 = vmatprep.subr.bf16.mxu1 %v6864_v10  ;;  %6295 = vmatprep.subr.bf16.mxu0 %v7412_v62  ;;  %v7533_v30 = vsub.f32 %v2974_v21, %v2989_v59  ;;  %v7593_v38 = vpack.c.bf16 %v2993_v48, %v2989_v59  ;;  %v7651_v25 = vpack.c.bf16 %v8390_v11, %v8391_v57  ;;  %v8393_v59 = vand.u32 4294901760, %v7619_v29  ;;  %v7688_v57 = vld [vmem:[%s8342_s10 + $0xb0] sm:$0xff] }
 0x2b5   :  { %2216 = vmatmul.mubr.f32.vlgmr.msra.gmra.mrb[18].mxu1 %v2039_v28  ;;  %2707 = vmatmul.mubr.f32.vlgmr.msra.gmra.mrb[10].mxu0 %v2039_v28  ;;  %v3074_v28 = vsub.f32 %v7523_v32, %v3073_v39  ;;  %v8500_v32 = vand.u32 4294901760, %v7514_v52 }
 0x2b6   :  { %6273 = vmatpush1.bf16.msra.mxu1 %v6868_v14  ;;  %6297 = vmatpush1.bf16.msra.mxu0 %v7414_v63 }
 0x2b7   :  { %2290 = vmatprep.mubr.f32.mxu1 %v8468_v46  ;;  %2781 = vmatprep.mubr.f32.mxu0 %v8468_v46  ;;  %v7822_v36 = vsub.f32 %v7514_v52, %v8500_v32  ;;  %v3581_v32 = vld [vmem:[%s8342_s10 + $0xd0] sm:$0xff] }
 0x2b8   :  { %6275 = vmatprep.subr.bf16.mxu1 %v8486_v42  ;;  %6299 = vmatprep.subr.bf16.mxu0 %v6298_v44  ;;  %v2995_v44 = vand.u32 4294901760, %v2975_v49  ;;  %v7614_v42 = vld [vmem:[%s8342_s10 + $0x10] sm:$0xff] }
 0x2b9   :  { %v8394_v40 = vand.u32 4294901760, %v7614_v42 }
 0x2ba   :  { %v7560_v3 = vsub.f32 %v2975_v49, %v2995_v44  ;;  %v7643_v21 = vpack.c.bf16 %v2995_v44, %v2991_v35  ;;  %v8398_v35 = vand.u32 4294901760, %v7641_v13  ;;  %v7670_v44 = vld [vmem:[%s8342_s10 + $0x20] sm:$0xff] }
 0x2bb   :  { %v7683_v11 = vpack.c.bf16 %v8393_v59, %v8394_v40 }
 0x2bc   :  { %v8402_v5 = vand.u32 4294901760, %v7560_v3 }
 0x2bd   :  { %2294 = vmatmul.mubr.f32.vlgmr.msra.gmra.mrb[18].mxu1 %v2040_v33  ;;  %2785 = vmatmul.mubr.f32.vlgmr.msra.gmra.mrb[10].mxu0 %v2040_v33  ;;  %v3069_v33 = vand.u32 4294901760, %v3068_v1  ;;  %v7675_v1 = vld [vmem:[%s8342_s10 + $0x28] sm:$0xff]  ;;  %8491 = vst [vmem:[#allocation29_spill] sm:$0xff] %v7683_v11 }
 0x2be   :  { %6277 = vmatpush1.bf16.msra.mxu1 %v8487_v26  ;;  %6301 = vmatpush1.bf16.msra.mxu0 %v7443_v55  ;;  %v8397_v55 = vand.u32 4294901760, %v7514_v52  ;;  %v3075_v26 = vand.u32 4294901760, %v3074_v28  ;;  %v3110_v49 = vsub.f32 %v7560_v3, %v8402_v5  ;;  %v8399_v59 = vand.u32 4294901760, %v7675_v1  ;;  %v7752_v5 = vld [vmem:[%s8342_s10 + $0x40] sm:$0xff] }
 0x2bf   :  { %2376 = vmatprep.mubr.f32.mxu1 %v8468_v46  ;;  %2867 = vmatprep.mubr.f32.mxu0 %v8468_v46 }
 0x2c0   :  { %6279 = vmatprep.subr.bf16.mxu1 %v6864_v10  ;;  %6303 = vmatprep.subr.bf16.mxu0 %v7412_v62  ;;  %v7535_v10 = vsub.f32 %v2976_v54, %v2993_v48  ;;  %v3079_v62 = vand.u32 4294901760, %v7506_v19  ;;  %v7548_v6 = vpack.c.bf16 %v8396_v2, %v8397_v55  ;;  %v3057_v54 = vsub.f32 %v7541_v51, %v7596_v20 }
 0x2c1   :  { %v3087_v48 = vand.u32 4294901760, %v3086_v27  ;;  %v3111_v53 = vand.u32 4294901760, %v3110_v49  ;;  %v8404_v2 = vand.u32 4294901760, %v7688_v57  ;;  %v8403_v55 = vand.u32 4294901760, %v7693_v31  ;;  %v7734_v49 = vld [vmem:[%s8342_s10 + $0xc8] sm:$0xff] }
 0x2c2   :  { %v3103_v50 = vand.u32 4294901760, %v7535_v10 }
 0x2c3   :  { %v6316_v40 = vpack.c.bf16 %v3087_v48, %v3075_v26  ;;  %v7729_v48 = vld [vmem:[%s8342_s10 + $0xc0] sm:$0xff] }
 0x2c4   :  { %v3104_v41 = vsub.f32 %v7535_v10, %v3103_v50 }
 0x2c5   :  { %2378 = vmatmul.mubr.f32.vlgmr.msra.gmra.mrb[18].mxu1 %v7458_v58  ;;  %2869 = vmatmul.mubr.f32.vlgmr.msra.gmra.mrb[10].mxu0 %v7458_v58 }
 0x2c6   :  { %6281 = vmatpush1.bf16.msra.mxu1 %v6868_v14  ;;  %6305 = vmatpush1.bf16.msra.mxu0 %v7414_v63  ;;  %v3080_v14 = vsub.f32 %v7506_v19, %v3079_v62  ;;  %v3091_v63 = vand.u32 4294901760, %v7533_v30  ;;  %v3105_v27 = vand.u32 4294901760, %v3104_v41  ;;  %v8400_v41 = vand.u32 4294901760, %v7670_v44 }
 0x2c7   :  { %2452 = vmatprep.mubr.f32.mxu1 %v8468_v46  ;;  %2943 = vmatprep.mubr.f32.mxu0 %v8468_v46 }
 0x2c8   :  { %6307 = vmatprep.subr.bf16.mxu1 %v7538_v17  ;;  %6355 = vmatprep.subr.bf16.mxu0 %v7548_v6  ;;  %v3081_v47 = vand.u32 4294901760, %v3080_v14  ;;  %v3092_v12 = vsub.f32 %v7533_v30, %v3091_v63  ;;  %v7724_v26 = vpack.c.bf16 %v8399_v59, %v8400_v41  ;;  %v3660_v41 = vand.u32 4294901760, %v7729_v48 }
 0x2ca   :  { %v6314_v14 = vpack.c.bf16 %v3081_v47, %v3069_v33  ;;  %v3093_v28 = vand.u32 4294901760, %v3092_v12  ;;  %v7702_v47 = vand.u32 4294901760, %v3057_v54  ;;  %v3099_v12 = vand.u32 4294901760, %v3098_v34  ;;  %v7717_v54 = vld [vmem:[%s8342_s10 + $0x38] sm:$0xff]  ;;  %8493 = vst [vmem:[#allocation31_spill] sm:$0xff] %v7724_v26 }
 0x2cc   :  { %v6318_v34 = vpack.c.bf16 %v3105_v27, %v3093_v28  ;;  %v8406_v27 = vand.u32 4294901760, %v7717_v54  ;;  %v6320_v59 = vpack.c.bf16 %v3111_v53, %v3099_v12  ;;  %v6322_v53 = vpack.c.bf16 %v7506_v19, %v7495_v24 }
 0x2cd   :  { %2454 = vmatmul.mubr.f32.vlgmr.msra.gmra.mrb[18].mxu1 %v7458_v58  ;;  %2945 = vmatmul.mubr.f32.vlgmr.msra.gmra.mrb[10].mxu0 %v7458_v58  ;;  %v8401_v58 = vand.u32 4294901760, %v7636_v16  ;;  %v8498_v24 = vand.u32 4294901760, %v7553_v18  ;;  %v8499_v19 = vand.u32 4294901760, %v7560_v3 }
 0x2ce   :  { %6309 = vmatpush1.bf16.msra.mxu1 %v7591_v45  ;;  %3053 = vmatprep.mubr.f32.mxu1 %v8468_v46 }
 0x2cf   :  { %6311 = vmatprep.subr.bf16.mxu1 %v7593_v38  ;;  %6357 = vmatpush3.bf16.msra.mxu0 %v7631_v8  ;;  %v7700_v33 = vpack.c.bf16 %v8398_v35, %v8401_v58  ;;  %v7712_v35 = vld [vmem:[%s8342_s10 + $0x30] sm:$0xff]  ;;  %v8407_v58 = vand.u32 4294901760, %v7734_v49 }
 0x2d0   :  { %6359 = vmatprep.subr.bf16.mxu0 %v7651_v25  ;;  %v3606_v28 = vand.u32 4294901760, %v7712_v35 }
 0x2d1   :  { %8492 = vst [vmem:[#allocation30_spill] sm:$0xff] %v7700_v33  ;;  %v7773_v12 = vpack.c.bf16 %v8407_v58, %v3660_v41 }
 0x2d2   :  { %6313 = vmatpush1.bf16.msra.mxu1 %v7643_v21 }
 0x2d3   :  { %6315 = vmatprep.subr.bf16.mxu1 %v6314_v14  ;;  %6361 = vmatpush3.bf16.msra.mxu0 %v7683_v11  ;;  %v7741_v14 = vpack.c.bf16 %v8403_v55, %v8404_v2  ;;  %v7757_v55 = vld [vmem:[%s8342_s10 + $0x48] sm:$0xff]  ;;  %8496 = vst [vmem:[#allocation34_spill] sm:$0xff] %v7773_v12 }
 0x2d4   :  { %6363 = vmatprep.subr.bf16.mxu0 %v7700_v33  ;;  %v3615_v2 = vand.u32 4294901760, %v7757_v55 }
 0x2d5   :  { %8494 = vst [vmem:[#allocation32_spill] sm:$0xff] %v7741_v14  ;;  %3059 = vmatmul.mubr.f32.vlgmr.msra.gmra.mrb[20].mxu1 %v7702_v47 }
 0x2d6   :  { %6317 = vmatpush1.bf16.msra.mxu1 %v6316_v40  ;;  %3169 = vmatprep.mubr.f32.mxu1 %v8468_v46  ;;  %v7766_v40 = vpack.c.bf16 %v8406_v27, %v3606_v28  ;;  %v6326_v27 = vpack.c.bf16 %v7535_v10, %v7533_v30  ;;  %v8501_v30 = vand.u32 4294901760, %v7519_v43 }
 0x2d7   :  { %6319 = vmatprep.subr.bf16.mxu1 %v6318_v34  ;;  %6365 = vmatpush3.bf16.msra.mxu0 %v7724_v26  ;;  %v3612_v34 = vand.u32 4294901760, %v7752_v5 }
 0x2d8   :  { %8495 = vst [vmem:[#allocation33_spill] sm:$0xff] %v7766_v40  ;;  %6367 = vmatprep.subr.bf16.mxu0 %v7741_v14  ;;  %v7827_v10 = vsub.f32 %v7519_v43, %v8501_v30 }
 0x2d9   :  { %v7786_v58 = vpack.c.bf16 %v3615_v2, %v3612_v34 }
 0x2da   :  { %6321 = vmatpush1.bf16.msra.mxu1 %v6320_v59  ;;  %v6328_v59 = vpack.c.bf16 %v7560_v3, %v7553_v18  ;;  %v6418_v43 = vpack.c.bf16 %v7827_v10, %v7822_v36  ;;  %v8504_v18 = vand.u32 4294901760, %v7583_v61 }
 0x2db   :  { %6323 = vmatprep.subr.bf16.mxu1 %v6322_v53  ;;  %6369 = vmatpush3.bf16.msra.mxu0 %v7766_v40  ;;  %8497 = vst [vmem:[#allocation35_spill] sm:$0xff] %v7786_v58  ;;  %v6342_v53 = vpack.c.bf16 %v3103_v50, %v3091_v63  ;;  %v8506_v63 = vand.u32 4294901760, %v7614_v42  ;;  %v8507_v50 = vand.u32 4294901760, %v7619_v29 }
 0x2dc   :  { %6371 = vmatprep.subr.bf16.mxu0 %v7773_v12  ;;  %v7848_v3 = vsub.f32 %v7583_v61, %v8504_v18 }
 0x2dd   :  { %3171 = vmatmul.mubr.f32.vlgmr.msra.gmra.mrb[20].mxu1 %v7525_v7 }
 0x2de   :  { %6325 = vmatpush1.bf16.msra.mxu1 %v6324_v9  ;;  %3257 = vmatprep.mubr.f32.mxu1 %v8468_v46  ;;  %v6338_v9 = vpack.c.bf16 %v3079_v62, %v3067_v23  ;;  %v6344_v23 = vpack.c.bf16 %v8499_v19, %v8498_v24  ;;  %v8502_v62 = vand.u32 4294901760, %v7566_v15  ;;  %v8512_v24 = vand.u32 4294901760, %v7688_v57 }
 0x2df   :  { %6327 = vmatprep.subr.bf16.mxu1 %v6326_v27  ;;  %6373 = vmatpush3.bf16.msra.mxu0 %v7786_v58  ;;  %v6340_v27 = vpack.c.bf16 %v3085_v56, %v3073_v39  ;;  %v8503_v39 = vand.u32 4294901760, %v7571_v37  ;;  %v8505_v56 = vand.u32 4294901760, %v7588_v0  ;;  %v8513_v19 = vand.u32 4294901760, %v7693_v31 }
 0x2e1   :  { %v7840_v52 = vsub.f32 %v7571_v37, %v8503_v39  ;;  %v7858_v37 = vsub.f32 %v7614_v42, %v8506_v63  ;;  %v8509_v42 = vand.u32 4294901760, %v7641_v13  ;;  %v3566_v63 = vld [vmem:[%s8342_s10 + $0x58] sm:$0xff] }
 0x2e2   :  { %6329 = vmatpush1.bf16.msra.mxu1 %v6328_v59 }
 0x2e3   :  { %6331 = vmatprep.subr.bf16.mxu1 %v7538_v17 }
 0x2e5   :  { %3260 = vmatmul.mubr.f32.vlgmr.msra.gmra.mrb[20].mxu1 %v7541_v51 }
 0x2e6   :  { %6333 = vmatpush1.bf16.msra.mxu1 %v7591_v45  ;;  %3338 = vmatprep.mubr.f32.mxu1 %v8468_v46 }
 0x2e7   :  { %6335 = vmatprep.subr.bf16.mxu1 %v7593_v38 }
 0x2ea   :  { %6337 = vmatpush1.bf16.msra.mxu1 %v7643_v21 }
 0x2eb   :  { %6339 = vmatprep.subr.bf16.mxu1 %v6338_v9  ;;  %v7878_v9 = vsub.f32 %v7641_v13, %v8509_v42  ;;  %v7896_v13 = vsub.f32 %v7688_v57, %v8512_v24  ;;  %v7914_v57 = vsub.f32 %v7712_v35, %v3606_v28  ;;  %v8515_v35 = vand.u32 4294901760, %v7734_v49 }
 0x2ed   :  { %3342 = vmatmul.mubr.f32.vlgmr.msra.gmra.mrb[20].mxu1 %v7596_v20  ;;  %v7933_v28 = vsub.f32 %v7734_v49, %v8515_v35 }
 0x2ee   :  { %6341 = vmatpush1.bf16.msra.mxu1 %v6340_v27  ;;  %3436 = vmatprep.mubr.f32.mxu1 %v8468_v46 }
 0x2ef   :  { %6343 = vmatprep.subr.bf16.mxu1 %v6342_v53  ;;  %v8511_v53 = vand.u32 4294901760, %v7675_v1 }
 0x2f2   :  { %6345 = vmatpush1.bf16.msra.mxu1 %v6344_v23  ;;  %v7901_v23 = vsub.f32 %v7693_v31, %v8513_v19  ;;  %v8514_v31 = vand.u32 4294901760, %v7717_v54 }
 0x2f3   :  { %6347 = vmatprep.subr.bf16.mxu1 %v7538_v17  ;;  %v7835_v17 = vsub.f32 %v7566_v15, %v8502_v62  ;;  %v7853_v15 = vsub.f32 %v7588_v0, %v8505_v56  ;;  %v3565_v56 = vld [vmem:[%s8342_s10 + $0x50] sm:$0xff] }
 0x2f4   :  { %v7919_v30 = vsub.f32 %v7717_v54, %v8514_v31  ;;  %v6430_v39 = vpack.c.bf16 %v7901_v23, %v7896_v13  ;;  %v3666_v54 = vand.u32 4294901760, %v3581_v32  ;;  %v3618_v49 = vand.u32 4294901760, %v3565_v56 }
 0x2f5   :  { %3438 = vmatmul.mubr.f32.vlgmr.msra.gmra.mrb[20].mxu1 %v7525_v7  ;;  %v6420_v61 = vpack.c.bf16 %v7840_v52, %v7835_v17  ;;  %v6422_v0 = vpack.c.bf16 %v7853_v15, %v7848_v3 }
 0x2f6   :  { %6349 = vmatpush1.bf16.msra.mxu1 %v7591_v45  ;;  %3516 = vmatprep.mubr.f32.mxu1 %v8468_v46  ;;  %v7863_v45 = vsub.f32 %v7619_v29, %v8507_v50  ;;  %v6432_v50 = vpack.c.bf16 %v7919_v30, %v7914_v57 }
 0x2f7   :  { %6351 = vmatprep.subr.bf16.mxu1 %v7593_v38  ;;  %v8508_v38 = vand.u32 4294901760, %v7636_v16 }
 0x2f8   :  { %v6424_v29 = vpack.c.bf16 %v7863_v45, %v7858_v37 }
 0x2f9   :  { %v7873_v59 = vsub.f32 %v7636_v16, %v8508_v38  ;;  %v7891_v16 = vsub.f32 %v7675_v1, %v8511_v53  ;;  %v3582_v1 = vld [vmem:[%s8342_s10 + $0xd8] sm:$0xff]  ;;  %v7955_v38 = vsub.f32 %v3581_v32, %v3666_v54  ;;  %v3584_v53 = vld [vmem:[%s8342_s10 + $0xe8] sm:$0xff] }
 0x2fa   :  { %6353 = vmatpush1.bf16.msra.mxu1 %v7643_v21  ;;  %v8510_v21 = vand.u32 4294901760, %v7670_v44  ;;  %v3669_v18 = vand.u32 4294901760, %v3582_v1  ;;  %v3675_v19 = vand.u32 4294901760, %v3584_v53  ;;  %v3568_v32 = vld [vmem:[%s8342_s10 + $0x68] sm:$0xff] }
 0x2fb   :  { %6419 = vmatprep.subr.bf16.mxu1 %v6418_v43  ;;  %v7928_v43 = vsub.f32 %v7729_v48, %v3660_v41  ;;  %v7946_v41 = vsub.f32 %v7752_v5, %v3612_v34  ;;  %v7951_v48 = vsub.f32 %v7757_v55, %v3615_v2  ;;  %v7961_v34 = vsub.f32 %v3565_v56, %v3618_v49 }
 0x2fc   :  { %v7886_v27 = vsub.f32 %v7670_v44, %v8510_v21  ;;  %v6426_v44 = vpack.c.bf16 %v7878_v9, %v7873_v59  ;;  %v7957_v42 = vsub.f32 %v3582_v1, %v3669_v18  ;;  %v3583_v21 = vld [vmem:[%s8342_s10 + $0xe0] sm:$0xff]  ;;  %v3627_v31 = vand.u32 4294901760, %v3568_v32 }
 0x2fd   :  { %3518 = vmatmul.mubr.f32.vlgmr.msra.gmra.mrb[20].mxu1 %v7525_v7  ;;  %v6436_v5 = vpack.c.bf16 %v7951_v48, %v7946_v41  ;;  %v3672_v24 = vand.u32 4294901760, %v3583_v21  ;;  %v7993_v20 = vpack.c.bf16 %v3669_v18, %v3666_v54  ;;  %v3821_v54 = vand.u32 4294901760, %v7827_v10 }
 0x2fe   :  { %6421 = vmatpush3.bf16.msra.mxu1 %v6420_v61  ;;  %v6428_v62 = vpack.c.bf16 %v7891_v16, %v7886_v27  ;;  %v3621_v61 = vand.u32 4294901760, %v3566_v63  ;;  %v6438_v55 = vpack.c.bf16 %v7957_v42, %v7955_v38  ;;  %v3792_v56 = vsub.f32 %v3568_v32, %v3627_v31 }
 0x2ff   :  { %6423 = vmatprep.subr.bf16.mxu1 %v6422_v0  ;;  %v6434_v0 = vpack.c.bf16 %v7933_v28, %v7928_v43  ;;  %8516 = vst [vmem:[#allocation16_spill] sm:$0xff] %v7993_v20  ;;  %6375 = vmatprep.subr.bf16.mxu0 %v7993_v20  ;;  %v7999_v26 = vpack.c.bf16 %v3675_v19, %v3672_v24 }
 0x300   :  { %v7995_v12 = vpack.c.bf16 %v3621_v61, %v3618_v49 }
 0x301   :  { %8518 = vst [vmem:[#allocation19_spill] sm:$0xff] %v7999_v26 }
 0x302   :  { %6425 = vmatpush3.bf16.msra.mxu1 %v6424_v29  ;;  %v7963_v29 = vsub.f32 %v3566_v63, %v3621_v61  ;;  %v3585_v63 = vld [vmem:[%s8342_s10 + $0xf0] sm:$0xff]  ;;  %8517 = vst [vmem:[#allocation15_spill] sm:$0xff] %v7995_v12  ;;  %6377 = vmatpush3.bf16.msra.mxu0 %v7995_v12 }
 0x303   :  { %6427 = vmatprep.subr.bf16.mxu1 %v6426_v44  ;;  %v3567_v44 = vld [vmem:[%s8342_s10 + $0x60] sm:$0xff]  ;;  %6379 = vmatprep.subr.bf16.mxu0 %v7999_v26 }
 0x304   :  { %v6440_v2 = vpack.c.bf16 %v7963_v29, %v7961_v34  ;;  %v3624_v1 = vand.u32 4294901760, %v3567_v44 }
 0x306   :  { %6429 = vmatpush3.bf16.msra.mxu1 %v6428_v62  ;;  %v3897_v62 = vsub.f32 %v3583_v21, %v3672_v24  ;;  %v3785_v35 = vsub.f32 %v3567_v44, %v3624_v1  ;;  %v3570_v21 = vld [vmem:[%s8342_s10 + $0x78] sm:$0xff]  ;;  %v8003_v18 = vpack.c.bf16 %v3627_v31, %v3624_v1  ;;  %v3822_v24 = vsub.f32 %v7827_v10, %v3821_v54 }
 0x307   :  { %6431 = vmatprep.subr.bf16.mxu1 %v6430_v39  ;;  %v3904_v39 = vsub.f32 %v3584_v53, %v3675_v19  ;;  %v3633_v32 = vand.u32 4294901760, %v3570_v21 }
 0x308   :  { %v6444_v53 = vpack.c.bf16 %v3792_v56, %v3785_v35  ;;  %8519 = vst [vmem:[#allocation21_spill] sm:$0xff] %v8003_v18  ;;  %6381 = vmatpush3.bf16.msra.mxu0 %v8003_v18  ;;  %v3898_v31 = vand.u32 4294901760, %v3897_v62 }
 0x309   :  { %v3806_v14 = vsub.f32 %v3570_v21, %v3633_v32  ;;  %v3793_v21 = vand.u32 4294901760, %v3792_v56 }
 0x30a   :  { %6433 = vmatpush3.bf16.msra.mxu1 %v6432_v50  ;;  %v3586_v50 = vld [vmem:[%s8342_s10 + $0xf8] sm:$0xff] }
 0x30b   :  { %6435 = vmatprep.subr.bf16.mxu1 %v6434_v0  ;;  %v6442_v0 = vpack.c.bf16 %v3904_v39, %v3897_v62  ;;  %v3807_v10 = vand.u32 4294901760, %v3806_v14 }
 0x30d   :  { %v3808_v11 = vsub.f32 %v3806_v14, %v3807_v10 }
 0x30e   :  { %6437 = vmatpush3.bf16.msra.mxu1 %v6436_v5  ;;  %v3678_v5 = vand.u32 4294901760, %v3585_v63 }
 0x30f   :  { %6439 = vmatprep.subr.bf16.mxu1 %v6438_v55  ;;  %v3681_v55 = vand.u32 4294901760, %v3586_v50 }
 0x310   :  { %v3911_v51 = vsub.f32 %v3585_v63, %v3678_v5 }
 0x311   :  { %v3918_v58 = vsub.f32 %v3586_v50, %v3681_v55  ;;  %v8007_v61 = vpack.c.bf16 %v3681_v55, %v3678_v5  ;;  %v3905_v50 = vand.u32 4294901760, %v3904_v39 }
 0x312   :  { %6441 = vmatpush3.bf16.msra.mxu1 %v6440_v2  ;;  %v3569_v2 = vld [vmem:[%s8342_s10 + $0x70] sm:$0xff] }
 0x313   :  { %v3630_v44 = vand.u32 4294901760, %v3569_v2  ;;  %6443 = vmatprep.subr.bf16.mxu1 %v6442_v0  ;;  %v6446_v7 = vpack.c.bf16 %v3918_v58, %v3911_v51  ;;  %v3814_v0 = vand.u32 4294901760, %v7822_v36  ;;  %8520 = vst [vmem:[#allocation23_spill] sm:$0xff] %v8007_v61  ;;  %6383 = vmatprep.subr.bf16.mxu0 %v8007_v61  ;;  %v8015_v5 = vpack.c.bf16 %v3905_v50, %v3898_v31 }
 0x315   :  { %v3799_v40 = vsub.f32 %v3569_v2, %v3630_v44  ;;  %v6482_v49 = vpack.c.bf16 %v3821_v54, %v3814_v0  ;;  %v3815_v63 = vsub.f32 %v7822_v36, %v3814_v0  ;;  %v3786_v2 = vand.u32 4294901760, %v3785_v35 }
 0x316   :  { %6445 = vmatpush3.bf16.msra.mxu1 %v6444_v53  ;;  %v3912_v36 = vand.u32 4294901760, %v3911_v51  ;;  %v3919_v53 = vand.u32 4294901760, %v3918_v58  ;;  %v3906_v54 = vsub.f32 %v3904_v39, %v3905_v50 }
 0x317   :  { %v6448_v4 = vpack.c.bf16 %v3806_v14, %v3799_v40  ;;  %6447 = vmatprep.subr.bf16.mxu1 %v6446_v7  ;;  %v8010_v7 = vpack.c.bf16 %v3633_v32, %v3630_v44  ;;  %v3816_v19 = vand.u32 4294901760, %v3815_v63  ;;  %v8017_v55 = vpack.c.bf16 %v3793_v21, %v3786_v2 }
 0x318   :  { %v3800_v44 = vand.u32 4294901760, %v3799_v40  ;;  %v3899_v32 = vsub.f32 %v3897_v62, %v3898_v31  ;;  %v8019_v0 = vpack.c.bf16 %v3919_v53, %v3912_v36  ;;  %v3920_v61 = vsub.f32 %v3918_v58, %v3919_v53 }
 0x319   :  { %8521 = vst [vmem:[#allocation36_spill] sm:$0xff] %v8010_v7  ;;  %6385 = vmatpush3.bf16.msra.mxu0 %v8010_v7  ;;  %v3913_v7 = vsub.f32 %v3911_v51, %v3912_v36  ;;  %v3709_v51 = vand.u32 4294901760, %v7840_v52 }
 0x31a   :  { %6449 = vmatpush3.bf16.msra.mxu1 %v6448_v4  ;;  %v3823_v4 = vand.u32 4294901760, %v3822_v24  ;;  %v8021_v63 = vpack.c.bf16 %v3807_v10, %v3800_v44  ;;  %v3900_v24 = vand.u32 4294901760, %v3899_v32  ;;  %v3801_v26 = vsub.f32 %v3799_v40, %v3800_v44 }
 0x31b   :  { %6483 = vmatprep.subr.bf16.mxu1 %v6482_v49  ;;  %v3787_v49 = vsub.f32 %v3785_v35, %v3786_v2  ;;  %v3914_v20 = vand.u32 4294901760, %v3913_v7  ;;  %v3921_v33 = vand.u32 4294901760, %v3920_v61  ;;  %v3809_v35 = vand.u32 4294901760, %v3808_v11 }
 0x31c   :  { %v6386_v1 = vpack.c.bf16 %v3823_v4, %v3816_v19  ;;  %v3794_v19 = vsub.f32 %v3792_v56, %v3793_v21  ;;  %v3907_v4 = vand.u32 4294901760, %v3906_v54  ;;  %v3802_v39 = vand.u32 4294901760, %v3801_v26 }
 0x31d   :  { %v8027_v31 = vpack.c.bf16 %v3921_v33, %v3914_v20  ;;  %v3702_v56 = vand.u32 4294901760, %v7835_v17  ;;  %v3710_v40 = vsub.f32 %v7840_v52, %v3709_v51  ;;  %v3828_v20 = vand.u32 4294901760, %v7848_v3 }
 0x31e   :  { %6387 = vmatprep.subr.bf16.mxu0 %v6386_v1  ;;  %v3788_v1 = vand.u32 4294901760, %v3787_v49  ;;  %v3795_v18 = vand.u32 4294901760, %v3794_v19  ;;  %v8023_v12 = vpack.c.bf16 %v3907_v4, %v3900_v24  ;;  %v8029_v50 = vpack.c.bf16 %v3809_v35, %v3802_v39 }
 0x31f   :  { %v3703_v58 = vsub.f32 %v7835_v17, %v3702_v56  ;;  %v3835_v11 = vand.u32 4294901760, %v7853_v15  ;;  %v3716_v26 = vand.u32 4294901760, %v7858_v37  ;;  %v3723_v21 = vand.u32 4294901760, %v7863_v45 }
 0x320   :  { %v8025_v62 = vpack.c.bf16 %v3795_v18, %v3788_v1  ;;  %v3711_v36 = vand.u32 4294901760, %v3710_v40  ;;  %v3842_v44 = vand.u32 4294901760, %v7873_v59  ;;  %v3849_v10 = vand.u32 4294901760, %v7878_v9 }
 0x321   :  { %v3704_v52 = vand.u32 4294901760, %v3703_v58  ;;  %v3829_v32 = vsub.f32 %v7848_v3, %v3828_v20  ;;  %v6484_v49 = vpack.c.bf16 %v3709_v51, %v3702_v56  ;;  %v3836_v24 = vsub.f32 %v7853_v15, %v3835_v11 }
 0x322   :  { %v6486_v4 = vpack.c.bf16 %v3835_v11, %v3828_v20  ;;  %v6488_v1 = vpack.c.bf16 %v3723_v21, %v3716_v26  ;;  %v3717_v39 = vsub.f32 %v7858_v37, %v3716_v26  ;;  %v3730_v58 = vand.u32 4294901760, %v7886_v27 }
 0x323   :  { %v3737_v3 = vand.u32 4294901760, %v7891_v16  ;;  %v3724_v40 = vsub.f32 %v7863_v45, %v3723_v21  ;;  %v6388_v56 = vpack.c.bf16 %v3711_v36, %v3704_v52  ;;  %v6490_v51 = vpack.c.bf16 %v3849_v10, %v3842_v44 }
 0x324   :  { %v3718_v20 = vand.u32 4294901760, %v3717_v39  ;;  %v3856_v11 = vand.u32 4294901760, %v7896_v13  ;;  %v3863_v26 = vand.u32 4294901760, %v7901_v23  ;;  %v3744_v52 = vand.u32 4294901760, %v7914_v57 }
 0x325   :  { %v3725_v21 = vand.u32 4294901760, %v3724_v40 }
 0x326   :  { %v6494_v40 = vpack.c.bf16 %v3863_v26, %v3856_v11 }
 0x3a0   :  { %v2455_v2 = vpop.f32.mrb[18].mxu1  ;;  %v2946_v7 = vpop.f32.mrb[10].mxu0 }
 0x3a1   :  { %v8035_v61 = vmul.f32 %v2946_v7, %v2455_v2  ;;  %v2457_v14 = vpop.f32.mrb[19].mxu1  ;;  %v2948_v18 = vpop.f32.mrb[11].mxu0  ;;  %v3830_v2 = vand.u32 4294901760, %v3829_v32  ;;  %v3837_v7 = vand.u32 4294901760, %v3836_v24  ;;  %v3864_v32 = vsub.f32 %v7901_v23, %v3863_v26 }
 0x3a2   :  { %v8038_v33 = vmul.f32 %v2948_v18, %v2457_v14  ;;  %v3843_v14 = vsub.f32 %v7873_v59, %v3842_v44  ;;  %v3850_v18 = vsub.f32 %v7878_v9, %v3849_v10  ;;  %v3751_v59 = vand.u32 4294901760, %v7919_v30 }
 0x3a3   :  { %v8044_v17 = vand.u32 4294901760, %v8035_v61  ;;  %v3731_v9 = vsub.f32 %v7886_v27, %v3730_v58  ;;  %v3738_v44 = vsub.f32 %v7891_v16, %v3737_v3  ;;  %v3857_v10 = vsub.f32 %v7896_v13, %v3856_v11 }
 0x3a4   :  { %v8047_v53 = vand.u32 4294901760, %v8038_v33  ;;  %v6390_v24 = vpack.c.bf16 %v3837_v7, %v3830_v2  ;;  %v3844_v39 = vand.u32 4294901760, %v3843_v14  ;;  %v6392_v27 = vpack.c.bf16 %v3725_v21, %v3718_v20 }
 0x3a5   :  { %v8054_v54 = vsub.f32 %v8035_v61, %v8044_v17  ;;  %v3745_v16 = vsub.f32 %v7914_v57, %v3744_v52  ;;  %v3752_v13 = vsub.f32 %v7919_v30, %v3751_v59  ;;  %v3732_v23 = vand.u32 4294901760, %v3731_v9 }
 0x3a6   :  { %v8059_v19 = vsub.f32 %v8038_v33, %v8047_v53  ;;  %v3739_v2 = vand.u32 4294901760, %v3738_v44  ;;  %v3758_v57 = vand.u32 4294901760, %v7946_v41  ;;  %v3765_v30 = vand.u32 4294901760, %v7951_v48 }
 0x3a7   :  { %8522 = vst [vmem:[#allocation37_spill] sm:$0xff] %v8054_v54  ;;  %v8439_v35 = vand.u32 4294901760, %v8054_v54  ;;  %v3891_v20 = vand.u32 4294901760, %v7957_v42  ;;  %v3779_v9 = vand.u32 4294901760, %v7963_v29 }
 0x3a8   :  { %4061 = vmatprep.mubr.f32.mxu1 %v8059_v19  ;;  %v8440_v15 = vand.u32 4294901760, %v8059_v19 }
 0x3a9   :  { %4064 = vmatmul.mubr.f32.vlgmr.msra.gmra.mrb[22].mxu1 %v8054_v54  ;;  %v3692_v37 = vsub.f32 %v8054_v54, %v8439_v35  ;;  %v3851_v35 = vand.u32 4294901760, %v3850_v18  ;;  %v3877_v54 = vand.u32 4294901760, %v7933_v28  ;;  %v3753_v18 = vand.u32 4294901760, %v3752_v13  ;;  %v3554_v13 = vld [vmem:[%s8341_s9 + $0x18] sm:$0xff] }
 0x3aa   :  { %6485 = vmatpush3.bf16.msra.mxu1 %v6484_v49  ;;  %4338 = vmatprep.mubr.f32.mxu1 %v8047_v53  ;;  %v3686_v45 = vsub.f32 %v8059_v19, %v8440_v15  ;;  %v3870_v15 = vand.u32 4294901760, %v7928_v43  ;;  %v3892_v21 = vsub.f32 %v7957_v42, %v3891_v20 }
 0x3ab   :  { %6487 = vmatprep.subr.bf16.mxu1 %v6486_v4  ;;  %v3693_v49 = vand.u32 4294901760, %v3692_v37  ;;  %v6492_v4 = vpack.c.bf16 %v3737_v3, %v3730_v58  ;;  %v3865_v37 = vand.u32 4294901760, %v3864_v32  ;;  %v6394_v58 = vpack.c.bf16 %v3851_v35, %v3844_v39 }
 0x3ac   :  { %v3687_v36 = vand.u32 4294901760, %v3686_v45  ;;  %v3871_v3 = vsub.f32 %v7928_v43, %v3870_v15  ;;  %v3878_v7 = vsub.f32 %v7933_v28, %v3877_v54  ;;  %v6498_v14 = vpack.c.bf16 %v3877_v54, %v3870_v15 }
 0x3ad   :  { %v3884_v45 = vand.u32 4294901760, %v7955_v38  ;;  %v6396_v35 = vpack.c.bf16 %v3739_v2, %v3732_v23  ;;  %v3759_v43 = vsub.f32 %v7946_v41, %v3758_v57  ;;  %v3766_v28 = vsub.f32 %v7951_v48, %v3765_v30  ;;  %v3551_v41 = vld [vmem:[%s8341_s9] sm:$0xff]  ;;  %v3552_v48 = vld [vmem:[%s8341_s9 + $0x8] sm:$0xff] }
 0x3ae   :  { %6489 = vmatpush3.bf16.msra.mxu1 %v6488_v1  ;;  %3688 = vmatprep.mubr.f32.mxu0 %v3687_v36  ;;  %v3858_v1 = vand.u32 4294901760, %v3857_v10  ;;  %v3872_v54 = vand.u32 4294901760, %v3871_v3  ;;  %v3879_v15 = vand.u32 4294901760, %v3878_v7  ;;  %v3780_v32 = vsub.f32 %v7963_v29, %v3779_v9 }
 0x3af   :  { %3694 = vmatmul.mubr.f32.vlgmr.msra.gmra.mrb[12].mxu0 %v3693_v49  ;;  %6491 = vmatprep.subr.bf16.mxu1 %v6490_v51  ;;  %v6496_v51 = vpack.c.bf16 %v3751_v59, %v3744_v52  ;;  %v3885_v26 = vsub.f32 %v7955_v38, %v3884_v45  ;;  %v6500_v52 = vpack.c.bf16 %v3765_v30, %v3758_v57  ;;  %v3772_v59 = vand.u32 4294901760, %v7961_v34 }
 0x3b0   :  { %6389 = vmatpush3.bf16.msra.mxu0 %v6388_v56  ;;  %3924 = vmatprep.mubr.f32.mxu0 %v8047_v53  ;;  %v3746_v56 = vand.u32 4294901760, %v3745_v16  ;;  %v6398_v11 = vpack.c.bf16 %v3865_v37, %v3858_v1  ;;  %v6502_v44 = vpack.c.bf16 %v3891_v20, %v3884_v45  ;;  %v3760_v38 = vand.u32 4294901760, %v3759_v43  ;;  %v3553_v16 = vld [vmem:[%s8341_s9 + $0x10] sm:$0xff] }
 0x3b1   :  { %6391 = vmatprep.subr.bf16.mxu0 %v6390_v24  ;;  %v3767_v42 = vand.u32 4294901760, %v3766_v28  ;;  %v3773_v10 = vsub.f32 %v7961_v34, %v3772_v59  ;;  %v6402_v49 = vpack.c.bf16 %v3879_v15, %v3872_v54  ;;  %v3886_v24 = vand.u32 4294901760, %v3885_v26 }
 0x3b2   :  { %6493 = vmatpush3.bf16.msra.mxu1 %v6492_v4  ;;  %v6400_v36 = vpack.c.bf16 %v3753_v18, %v3746_v56  ;;  %v3893_v39 = vand.u32 4294901760, %v3892_v21  ;;  %v6504_v4 = vpack.c.bf16 %v3779_v9, %v3772_v59  ;;  %v3781_v23 = vand.u32 4294901760, %v3780_v32 }
 0x3b3   :  { %6495 = vmatprep.subr.bf16.mxu1 %v6494_v40  ;;  %v4450_v40 = vand.u32 4294901760, %v3551_v41  ;;  %v6404_v34 = vpack.c.bf16 %v3767_v42, %v3760_v38  ;;  %v3774_v29 = vand.u32 4294901760, %v3773_v10  ;;  %v4459_v3 = vand.u32 4294901760, %v3554_v13 }
 0x3b4   :  { %6393 = vmatpush3.bf16.msra.mxu0 %v6392_v27  ;;  %v4453_v27 = vand.u32 4294901760, %v3552_v48  ;;  %v6406_v2 = vpack.c.bf16 %v3893_v39, %v3886_v24  ;;  %v8524_v28 = vsub.s32 1, %v7273_v22  ;;  %v6754_v15 = vmov 1966171168   ;;  %v8528_v39 = vld [vmem:[#allocation31_spill] sm:$0xff] }
 0x3b5   :  { %6395 = vmatprep.subr.bf16.mxu0 %v6394_v58  ;;  %v8117_v1 = vsub.f32 %v3551_v41, %v4450_v40  ;;  %v4456_v58 = vand.u32 4294901760, %v3553_v16  ;;  %v6408_v7 = vpack.c.bf16 %v3781_v23, %v3774_v29  ;;  %v3532_v26 = vunpack.c.l.s4 %v6754_v15  ;;  %v8532_v29 = vld [vmem:[#allocation33_spill] sm:$0xff] }
 0x3b6   :  { %6497 = vmatpush3.bf16.msra.mxu1 %v6496_v51  ;;  %v8119_v37 = vsub.f32 %v3552_v48, %v4453_v27  ;;  %v8131_v56 = vpack.c.bf16 %v4453_v27, %v4450_v40  ;;  %v8529_v40 = vld [vmem:[#allocation24_spill] sm:$0xff] }
 0x3b7   :  { %6499 = vmatprep.subr.bf16.mxu1 %v6498_v14  ;;  %v8123_v51 = vsub.f32 %v3553_v16, %v4456_v58  ;;  %v8125_v14 = vsub.f32 %v3554_v13, %v4459_v3  ;;  %v4531_v57 = vand.u32 4294901760, %v8117_v1  ;;  %v3533_v41 = vunpack.c.0.s8 %v3532_v26  ;;  %v8531_v13 = vld [vmem:[#allocation32_spill] sm:$0xff] }
 0x3b8   :  { %6397 = vmatpush3.bf16.msra.mxu0 %v6396_v35  ;;  %v4538_v30 = vand.u32 4294901760, %v8119_v37  ;;  %v6559_v24 = vpack.c.bf16 %v8119_v37, %v8117_v1 }
 0x3b9   :  { %6399 = vmatprep.subr.bf16.mxu0 %v6398_v11  ;;  %v4545_v18 = vand.u32 4294901760, %v8123_v51  ;;  %v4552_v45 = vand.u32 4294901760, %v8125_v14  ;;  %v3536_v32 = vsub.s32 %v3533_v41, %v7273_v22 }
 0x3ba   :  { %6501 = vmatpush3.bf16.msra.mxu1 %v6500_v52 }
 0x3bb   :  { %6503 = vmatprep.subr.bf16.mxu1 %v6502_v44  ;;  %v4553_v11 = vsub.f32 %v8125_v14, %v4552_v45 }
 0x3bc   :  { %6401 = vmatpush3.bf16.msra.mxu0 %v6400_v36 }
 0x3bd   :  { %6403 = vmatprep.subr.bf16.mxu0 %v6402_v49  ;;  %v4554_v59 = vand.u32 4294901760, %v4553_v11  ;;  %v8527_v49 = vld [vmem:[#allocation30_spill] sm:$0xff]  ;;  %v8542_v11 = vld [vmem:[#allocation23_spill] sm:$0xff] }
 0x3be   :  { %6505 = vmatpush3.bf16.msra.mxu1 %v6504_v4  ;;  %v6664_v4 = vld [vmem:[#allocation3] sm:$0x3] }
 0x3bf   :  { %6507 = vmatprep.subr.bf16.mxu1 %v8015_v5  ;;  %v4532_v5 = vsub.f32 %v8117_v1, %v4531_v57  ;;  %v2954_v27 = vmul.f32 %v6664_v4, %v8529_v40  ;;  %v4934_v1 = vld [vmem:[%s8338_s6] sm:$0xff]  ;;  %s6755_s6 = smov [#allocation9]  }
 0x3c0   :  { %6405 = vmatpush3.bf16.msra.mxu0 %v6404_v34  ;;  %s5413_s8 = sshll.u32 %s6755_s6, 4  ;;  %s5414_s8 = int_to_ptr.vmem [resolvable:$true] %s5413_s8 }
 0x3c1   :  { %6407 = vmatprep.subr.bf16.mxu0 %v6406_v2  ;;  %v4533_v20 = vand.u32 4294901760, %v4532_v5  ;;  %v8533_v2 = vld [vmem:[#allocation34_spill] sm:$0xff]  ;;  %v8537_v5 = vld [vmem:[#allocation16_spill] sm:$0xff]  ;;  %s6678_s11 = scalar_lea.vmem %s5414_s8, 32  ;;  %p6683_p6 = scmp.lt.s32.totalorder %s5414_s8, %s5414_s8 }
 0x3c2   :  { %6509 = vmatpush3.bf16.msra.mxu1 %v8017_v55  ;;  %v4539_v55 = vsub.f32 %v8119_v37, %v4538_v30  ;;  %v8543_v37 = vld [vmem:[#allocation36_spill] sm:$0xff]  ;;  %p6679_p5 = scmp.ne.s32.totalorder %s5414_s8, %s6678_s11  ;;  %p6684_p7 = scmp.lt.s32.totalorder %s6678_s11, %s6678_s11 }
 0x3c3   :  { %6511 = vmatprep.subr.bf16.mxu1 %v8019_v0  ;;  %v6753_v0 = vmov 0.0|0.0  }
 0x3c4   :  { %6409 = vmatpush3.bf16.msra.mxu0 %v6408_v7  ;;  %v4540_v35 = vand.u32 4294901760, %v4539_v55  ;;  %v8536_v7 = vld [vmem:[#allocation26_spill] sm:$0xff]  ;;  %v8538_v55 = vld [vmem:[#allocation15_spill] sm:$0xff]  ;;  %p6685_p8 = por %p6684_p7, %p6683_p6 }
 0x3c5   :  { %6411 = vmatprep.subr.bf16.mxu0 %v8023_v12  ;;  %v2955_v12 = vld [vmem:[%s8339_s7] sm:$0x3] }
 0x3c6   :  { %6513 = vmatpush3.bf16.msra.mxu1 %v8021_v63  ;;  %v8149_v63 = vpack.c.bf16 %v4459_v3, %v4456_v58  ;;  %v2964_v54 = vrot.slane %v2955_v12, %v8524_v28  ;;  %v6553_v21 = vpack.c.bf16 %v4540_v35, %v4533_v20  ;;  %v8535_v3 = vld [vmem:[#allocation35_spill] sm:$0xff]  ;;  %v6571_v20 = vpack.c.bf16 %v4538_v30, %v4531_v57  ;;  %v8540_v35 = vld [vmem:[#allocation21_spill] sm:$0xff]  ;;  %p6686_p9 = pnand %p6685_p8, %p6679_p5 }
 0x3c7   :  { %6546 = vmatprep.subr.bf16.mxu1 %v6753_v0  ;;  %v4936_v57 = vand.u32 4294901760, %v4934_v1  ;;  %v8544_v30 = vld [vmem:[#allocation37_spill] sm:$0xff] }
 0x3c8   :  { %6413 = vmatpush3.bf16.msra.mxu0 %v8025_v62  ;;  %v4546_v62 = vsub.f32 %v8123_v51, %v4545_v18  ;;  %v2968_v44 = vmul.f32 %v2964_v54, %v8038_v33  ;;  %v8526_v33 = vld [vmem:[#allocation29_spill] sm:$0xff] }
 0x3c9   :  { %4340 = vmatmul.mubr.f32.vlgmr.msra.gmra.mrb[24].mxu1 %v8044_v17  ;;  %6415 = vmatprep.subr.bf16.mxu0 %v8027_v31  ;;  %v8523_v31 = vsub.s32 0, %v7273_v22  ;;  %v6562_v22 = vpack.c.bf16 %v8125_v14, %v8123_v51  ;;  %v8545_v51 = vand.u32 4294901760, %v8544_v30  ;;  %v8546_v14 = vld [vmem:[#allocation22_spill] sm:$0xff] }
 0x3ca   :  { %6548 = vmatpush3.bf16.msra.mxu1 %v8131_v56  ;;  %5954 = vmatprep.mubr.msk.f32.mxu1 %vm6752_vm3, %v8468_v46  ;;  %v4547_v52 = vand.u32 4294901760, %v4546_v62  ;;  %v8541_v62 = vld [vmem:[#allocation28_spill] sm:$0xff] }
 0x3cb   :  { %6549 = vmatprep.subr.bf16.mxu1 %v6753_v0  ;;  %v2960_v43 = vrot.slane %v2955_v12, %v8523_v31  ;;  %v8539_v12 = vld [vmem:[#allocation19_spill] sm:$0xff]  ;;  %v6574_v31 = vpack.c.bf16 %v4552_v45, %v4545_v18  ;;  %v8548_v18 = vld [vmem:[#allocation18_spill] sm:$0xff]  ;;  %v8549_v45 = vld [vmem:[#allocation20_spill] sm:$0xff] }
 0x3cc   :  { %6417 = vmatpush3.bf16.msra.mxu0 %v8029_v50  ;;  %v8525_v50 = vand.u32 4294901760, %v8059_v19 }
 0x3cd   :  { %6451 = vmatprep.subr.bf16.mxu0 %v7548_v6  ;;  %v2967_v9 = vmul.f32 %v2960_v43, %v8035_v61  ;;  %v6556_v61 = vpack.c.bf16 %v4554_v59, %v4547_v52 }
 0x3ce   :  { %6551 = vmatpush3.bf16.msra.mxu1 %v8149_v63 }
 0x3cf   :  { %3926 = vmatmul.mubr.f32.vlgmr.msra.gmra.mrb[14].mxu0 %v8044_v17  ;;  %6552 = vmatprep.subr.bf16.mxu1 %v6753_v0 }
 0x3d0   :  { %v3519_v36 = vpop.f32.mrb[20].mxu1  ;;  %6453 = vmatpush3.bf16.msra.mxu0 %v7631_v8  ;;  %4168 = vmatprep.mubr.f32.mxu0 %v8525_v50 }
 0x3d1   :  { %v3524_v48 = vadd.f32 %v3519_v36, %v2967_v9  ;;  %v3521_v38 = vpop.f32.mrb[21].mxu1  ;;  %5955 = vmatmul.mubr.f32.vlgmr.msra.gmra.mrb[26].mxu1 %v7702_v47  ;;  %6455 = vmatprep.subr.bf16.mxu0 %v7651_v25 }
 0x3d2   :  { %v3525_v42 = vadd.f32 %v3521_v38, %v2968_v44  ;;  %6554 = vmatpush3.bf16.msra.mxu1 %v6553_v21  ;;  %5965 = vmatprep.mubr.msk.f32.mxu1 %vm6752_vm3, %v8468_v46 }
 0x3d3   :  { %v3526_v10 = vmul.f32 %v3524_v48, %v7451_v60  ;;  %6555 = vmatprep.subr.bf16.mxu1 %v6753_v0 }
 0x3d4   :  { %v3527_v19 = vmul.f32 %v3525_v42, %v7451_v60  ;;  %6457 = vmatpush3.bf16.msra.mxu0 %v8526_v33  ;;  %v8530_v60 = vld [vmem:[#allocation25_spill] sm:$0xff] }
 0x3d5   :  { %6459 = vmatprep.subr.bf16.mxu0 %v8527_v49 }
 0x3d6   :  { %v3530_v47 = vcombine.low %v3526_v10, %v3527_v19  ;;  %6557 = vmatpush3.bf16.msra.mxu1 %v6556_v61 }
 0x3d7   :  { %6558 = vmatprep.subr.bf16.mxu1 %v6753_v0 }
 0x3d8   :  { %6461 = vmatpush3.bf16.msra.mxu0 %v8528_v39  ;;  %v3537_v16 = vrot.slane %v3530_v47, %v3536_v32 }
 0x3d9   :  { %5966 = vmatmul.mubr.f32.vlgmr.msra.gmra.mrb[26].mxu1 %v8530_v60  ;;  %6463 = vmatprep.subr.bf16.mxu0 %v8531_v13 }
 0x3da   :  { %6560 = vmatpush3.bf16.msra.mxu1 %v6559_v24  ;;  %5976 = vmatprep.mubr.msk.f32.mxu1 %vm6752_vm3, %v8468_v46  ;;  %v3544_v34 = vrot.slane %v3537_v16, %v3536_v32 }
 0x3db   :  { %6561 = vmatprep.subr.bf16.mxu1 %v6753_v0 }
 0x3dc   :  { %6465 = vmatpush3.bf16.msra.mxu0 %v8532_v29  ;;  %v3546_v23 = vadd.f32 %v3544_v34, %v2954_v27 }
 0x3dd   :  { %6467 = vmatprep.subr.bf16.mxu0 %v8533_v2 }
 0x3de   :  { %6563 = vmatpush3.bf16.msra.mxu1 %v6562_v22  ;;  %5391 = vst.msk [vmem:[#allocation3] sm:$0x3] %vm7168_vm4, %v3546_v23  ;;  %5395 = vst.msk [vmem:[#allocation9] sm:$0x3] %vm7168_vm4, %v3546_v23 }
 0x3df   :  { %6564 = vmatprep.subr.bf16.mxu1 %v6753_v0 }
 0x3e0   :  { %6469 = vmatpush3.bf16.msra.mxu0 %v8535_v3 }
 0x3e1   :  { %5977 = vmatmul.mubr.f32.vlgmr.msra.gmra.mrb[26].mxu1 %v8536_v7  ;;  %6471 = vmatprep.subr.bf16.mxu0 %v8537_v5 }
 0x3e2   :  { %6566 = vmatpush3.bf16.msra.mxu1 %v8131_v56  ;;  %5987 = vmatprep.mubr.msk.f32.mxu1 %vm6752_vm3, %v8468_v46 }
 0x3e3   :  { %6567 = vmatprep.subr.bf16.mxu1 %v6753_v0 }
 0x3e4   :  { %6473 = vmatpush3.bf16.msra.mxu0 %v8538_v55 }
 0x3e5   :  { %6475 = vmatprep.subr.bf16.mxu0 %v8539_v12 }
 0x3e6   :  { %6569 = vmatpush3.bf16.msra.mxu1 %v8149_v63 }
 0x3e7   :  { %6570 = vmatprep.subr.bf16.mxu1 %v6753_v0 }
 0x3e8   :  { %6477 = vmatpush3.bf16.msra.mxu0 %v8540_v35 }
 0x3e9   :  { %5988 = vmatmul.mubr.f32.vlgmr.msra.gmra.mrb[26].mxu1 %v8541_v62  ;;  %6479 = vmatprep.subr.bf16.mxu0 %v8542_v11 }
 0x3ea   :  { %6572 = vmatpush3.bf16.msra.mxu1 %v6571_v20  ;;  %5998 = vmatprep.mubr.msk.f32.mxu1 %vm6752_vm3, %v8468_v46 }
 0x3eb   :  { %6573 = vmatprep.subr.bf16.mxu1 %v6753_v0 }
 0x3ec   :  { %6481 = vmatpush3.bf16.msra.mxu0 %v8543_v37 }
 0x3ed   :  { %6515 = vmatprep.subr.bf16.mxu0 %v7548_v6  ;;  %v5013_v6 = vsub.f32 %v4934_v1, %v4936_v57 }
 0x3ee   :  { %6575 = vmatpush3.bf16.msra.mxu1 %v6574_v31 }
 0x3ef   :  { %4172 = vmatmul.mubr.f32.vlgmr.msra.gmra.mrb[16].mxu0 %v8545_v51  ;;  %6576 = vmatprep.subr.bf16.mxu1 %v6753_v0 }
 0x3f0   :  { %6517 = vmatpush3.bf16.msra.mxu0 %v7631_v8  ;;  %4442 = vmatprep.mubr.f32.mxu0 %v8047_v53  ;;  %v5014_v8 = vand.u32 4294901760, %v5013_v6 }
 0x3f1   :  { %5999 = vmatmul.mubr.f32.vlgmr.msra.gmra.mrb[26].mxu1 %v8530_v60  ;;  %6519 = vmatprep.subr.bf16.mxu0 %v7651_v25 }
 0x3f2   :  { %6578 = vmatpush3.bf16.msra.mxu1 %v8131_v56  ;;  %6009 = vmatprep.mubr.msk.f32.mxu1 %vm6752_vm3, %v8468_v46  ;;  %v5015_v25 = vsub.f32 %v5013_v6, %v5014_v8  ;;  %v8547_v56 = vld [vmem:[#allocation17_spill] sm:$0xff] }
 0x3f3   :  { %6579 = vmatprep.subr.bf16.mxu1 %v6753_v0 }
 0x3f4   :  { %6521 = vmatpush3.bf16.msra.mxu0 %v8526_v33  ;;  %v5016_v53 = vand.u32 4294901760, %v5015_v25 }
 0x3f5   :  { %6523 = vmatprep.subr.bf16.mxu0 %v8527_v49 }
 0x3f6   :  { %6581 = vmatpush3.bf16.msra.mxu1 %v8149_v63 }
 0x3f7   :  { %6012 = vmatprep.subr.mxu1 %v8468_v46 }
 0x3f8   :  { %6525 = vmatpush3.bf16.msra.mxu0 %v8528_v39 }
 0x3f9   :  { %6010 = vmatmul.mubr.f32.vlgmr.msra.gmra.mrb[26].mxu1 %v8530_v60  ;;  %6527 = vmatprep.subr.bf16.mxu0 %v8531_v13 }
 0x3fa   :  { %6013 = vmatpush3.msra.mxu1 %v4936_v57  ;;  %6014 = vmatprep.mubr.msk.f32.mxu1 %vm6752_vm3, %v8468_v46 }
 0x3fb   :  { %6017 = vmatprep.subr.mxu1 %v8468_v46 }
 0x3fc   :  { %6529 = vmatpush3.bf16.msra.mxu0 %v8532_v29 }
 0x3fd   :  { %6531 = vmatprep.subr.bf16.mxu0 %v8533_v2 }
 0x400   :  { %6533 = vmatpush3.bf16.msra.mxu0 %v8535_v3 }
 0x401   :  { %6015 = vmatmul.mubr.f32.vlgmr.msra.gmra.mrb[26].mxu1 %v8546_v14  ;;  %6535 = vmatprep.subr.bf16.mxu0 %v8537_v5 }
 0x402   :  { %6018 = vmatpush3.msra.mxu1 %v5016_v53  ;;  %6019 = vmatprep.mubr.msk.f32.mxu1 %vm6752_vm3, %v8468_v46 }
 0x403   :  { %6022 = vmatprep.subr.mxu1 %v8468_v46 }
 0x404   :  { %6537 = vmatpush3.bf16.msra.mxu0 %v8538_v55 }
 0x405   :  { %6539 = vmatprep.subr.bf16.mxu0 %v8539_v12 }
 0x408   :  { %6541 = vmatpush3.bf16.msra.mxu0 %v8540_v35 }
 0x409   :  { %6020 = vmatmul.mubr.f32.vlgmr.msra.gmra.mrb[26].mxu1 %v8547_v56  ;;  %6543 = vmatprep.subr.bf16.mxu0 %v8542_v11 }
 0x40a   :  { %6023 = vmatpush3.msra.mxu1 %v5013_v6  ;;  %6024 = vmatprep.mubr.msk.f32.mxu1 %vm6752_vm3, %v8468_v46 }
 0x40b   :  { %6027 = vmatprep.subr.mxu1 %v8468_v46 }
 0x40c   :  { %6545 = vmatpush3.bf16.msra.mxu0 %v8543_v37 }
 0x40f   :  { %4444 = vmatmul.mubr.f32.vlgmr.msra.gmra.mrb[18].mxu0 %v8044_v17 }
 0x411   :  { %6025 = vmatmul.mubr.f32.vlgmr.msra.gmra.mrb[26].mxu1 %v8548_v18 }
 0x412   :  { %6028 = vmatpush3.msra.mxu1 %v4936_v57  ;;  %6029 = vmatprep.mubr.msk.f32.mxu1 %vm6752_vm3, %v8468_v46 }
 0x413   :  { %6032 = vmatprep.subr.mxu1 %v8468_v46 }
 0x419   :  { %6030 = vmatmul.mubr.f32.vlgmr.msra.gmra.mrb[26].mxu1 %v8549_v45 }
 0x41a   :  { %6033 = vmatpush3.msra.mxu1 %v5014_v8  ;;  %6034 = vmatprep.mubr.msk.f32.mxu1 %vm6752_vm3, %v8468_v46 }
 0x41b   :  { %6037 = vmatprep.subr.mxu1 %v8468_v46 }
 0x421   :  { %6035 = vmatmul.mubr.f32.vlgmr.msra.gmra.mrb[26].mxu1 %v8547_v56 }
 0x422   :  { %6038 = vmatpush3.msra.mxu1 %v4936_v57  ;;  %6039 = vmatprep.mubr.msk.f32.mxu1 %vm6752_vm3, %v8468_v46 }
 0x429   :  { %6040 = vmatmul.mubr.f32.vlgmr.msra.gmra.mrb[26].mxu1 %v8547_v56 }
 0x47c   :  { %v5766_v17 = vpop.f32.mrb[22].mxu1 }
 0x47d   :  { %v5767_v0 = vpop.f32.mrb[23].mxu1 }
 0x47e   :  { %v5768_v63 = vadd.f32 %v5767_v0, %v5766_v17 }
 0x482   :  { %v5696_v43 = vpop.f32.mrb[12].mxu0 }
 0x483   :  { %6689 = shalt.err (!%p6686_p9)
}
 0x484   :  { %s6690_s1 = scalar_lea.hbm %s8347_s15, 32 }
 0x485   :  { %p6691_p10 = scmp.ne.s32.totalorder %s8347_s15, %s6690_s1  ;;  %p6694_p11 = scmp.lt.u32.totalorder %s6690_s1, %s8347_s15 }
 0x487   :  { %p6696_p12 = pnand %p6694_p11, %p6691_p10 }
 0x489   :  { %6699 = shalt.err (!%p6696_p12)
}
 0x48a   :  { %5416 = dma.vmem_to_hbm [thread:$0]  %s5414_s8, 32, %s8347_s15, [#allocation10]   ;;  %v5697_v46 = vpop.f32.mrb[13].mxu0 }
 0x48b   :  { %s6700_s29 = scalar_lea.vmem %s8285_s4, 16  ;;  %s6704_s10 = scalar_lea.vmem %s8285_s4, 32 }
 0x48c   :  { %p6701_p13 = scmp.ne.s32.totalorder %s8285_s4, %s6700_s29  ;;  %p6705_p0 = scmp.lt.s32.totalorder %s8285_s4, %s8285_s4 }
 0x48d   :  { %p6706_p1 = scmp.lt.s32.totalorder %s6704_s10, %s6700_s29 }
 0x48f   :  { %p6707_p2 = por %p6706_p1, %p6705_p0 }
 0x491   :  { %p6708_p3 = pnand %p6707_p2, %p6701_p13 }
 0x493   :  { %6711 = shalt.err (!%p6708_p3)
}
 0x494   :  { %s6712_s0 = scalar_lea.hbm %s8346_s14, 16 }
 0x495   :  { %p6713_p4 = scmp.ne.s32.totalorder %s8346_s14, %s6712_s0  ;;  %p6716_p5 = scmp.lt.u32.totalorder %s6712_s0, %s8346_s14 }
 0x497   :  { %p6718_p6 = pnand %p6716_p5, %p6713_p4 }
 0x499   :  { %6721 = shalt.err (!%p6718_p6)
}
 0x49a   :  { %5406 = dma.vmem_to_hbm [thread:$0]  %s8285_s4, 16, %s8346_s14, [#allocation6]   ;;  %v5698_v28 = vadd.f32 %v5697_v46, %v5696_v43  ;;  %v6665_v39 = vld [vmem:[#allocation4] sm:$0x1] }
 0x49b   :  { %s5439_s14 = sld [smem:[#allocation5 + $0x1]]  ;;  %s6757_s12 = smov [#allocation11]  }
 0x49c   :  { %v5836_v54 = vpop.f32.mrb[24].mxu1  ;;  %s5423_s6 = sshll.u32 %s6757_s12, 4  ;;  %s5424_s6 = int_to_ptr.vmem [resolvable:$true] %s5423_s6 }
 0x49d   :  { %v5837_v15 = vpop.f32.mrb[25].mxu1  ;;  %s6722_s8 = scalar_lea.vmem %s5424_s6, 16  ;;  %p6727_p8 = scmp.lt.s32.totalorder %s5424_s6, %s5424_s6 }
 0x49e   :  { %v5838_v26 = vadd.f32 %v5837_v15, %v5836_v54  ;;  %p6723_p7 = scmp.ne.s32.totalorder %s5424_s6, %s6722_s8 }
 0x4a1   :  { %s3547_s3 = smul.f32 %s5439_s14, %s7445_s2  ;;  %s6726_s2 = scalar_lea.vmem %s5424_s6, 32 }
 0x4a2   :  { %v5731_v21 = vpop.f32.mrb[14].mxu0  ;;  %p6728_p9 = scmp.lt.s32.totalorder %s6726_s2, %s6722_s8 }
 0x4a3   :  { %v5732_v52 = vpop.f32.mrb[15].mxu0  ;;  %s3548_s7 = ssub.f32 1.0, %s3547_s3  ;;  %v5382_v49 = vstv %s3547_s3 }
 0x4a4   :  { %v5733_v59 = vadd.f32 %v5732_v52, %v5731_v21  ;;  %p6729_p10 = por %p6728_p9, %p6727_p8 }
 0x4a5   :  { %v3549_v33 = vstv %s3548_s7 }
 0x4a6   :  { %v3928_v9 = vadd.f32 %v5733_v59, %v5698_v28  ;;  %v3550_v4 = vmul.f32 %v6665_v39, %v3549_v33  ;;  %p6730_p11 = pnand %p6729_p10, %p6723_p7 }
 0x4a8   :  { %v4066_v36 = vadd.f32 %v5768_v63, %v3928_v9 }
 0x4c2   :  { %v5801_v50 = vpop.f32.mrb[16].mxu0 }
 0x4c3   :  { %v5802_v44 = vpop.f32.mrb[17].mxu0 }
 0x4c4   :  { %v5803_v41 = vadd.f32 %v5802_v44, %v5801_v50 }
 0x4c6   :  { %v4174_v48 = vadd.f32 %v5803_v41, %v4066_v36 }
 0x4c8   :  { %v4342_v38 = vadd.f32 %v5838_v26, %v4174_v48 }
 0x4e2   :  { %v5871_v42 = vpop.f32.mrb[18].mxu0 }
 0x4e3   :  { %v5872_v61 = vpop.f32.mrb[19].mxu0 }
 0x4e4   :  { %v5873_v10 = vadd.f32 %v5872_v61, %v5871_v42 }
 0x4e6   :  { %v4446_v19 = vadd.f32 %v5873_v10, %v4342_v38 }
 0x4fc   :  { %v5377_v32 = vpop.f32.mrb[26].mxu1 }
 0x4fd   :  { %v6584_v47 = vadd.f32 %v5377_v32, %v4446_v19  ;;  %v6041_v24 = vpop.f32.mrb[27].mxu1 }
 0x4ff   :  { %v5383_v40 = vmul.f32 %v6584_v47, %v5382_v49 }
 0x501   :  { %v5384_v27 = vadd.f32 %v5383_v40, %v3550_v4 }
 0x503   :  { %5393 = vst.msk [vmem:[#allocation4] sm:$0x1] %vm81_vm5, %v5384_v27  ;;  %5396 = vst.msk [vmem:[#allocation11] sm:$0x1] %vm81_vm5, %v5384_v27 }
 0x504   :  { %6733 = shalt.err (!%p6730_p11)
}
 0x505   :  { %s6734_s11 = scalar_lea.hbm %s8348_s16, 16 }
 0x506   :  { %p6735_p12 = scmp.ne.s32.totalorder %s8348_s16, %s6734_s11  ;;  %p6738_p13 = scmp.lt.u32.totalorder %s6734_s11, %s8348_s16 }
 0x508   :  { %p6740_p0 = pnand %p6738_p13, %p6735_p12 }
 0x50a   :  { %6743 = shalt.err (!%p6740_p0)
}
 0x50b   :  { %5426 = dma.vmem_to_hbm [thread:$0]  %s5424_s6, 16, %s8348_s16, [#allocation10]  }
 0x50c   :  { %6746 = dma.done.wait [#allocation6], 16  }
 0x50d   :  { %6747 = vsyncadd [#allocation6], 4294967280 }
 0x50e   :  { %6748 = dma.done.wait [#allocation10], 48  }
 0x50f   :  { %6749 = vsyncadd [#allocation10], 4294967248 }
 0x510   :  { %5436 = vsyncpa [#allocation6], 1 }
 0x511   :  { %5437 = vsyncpa [#allocation10], 1 }
 0x512   :  { %5438 = vsyncpa [#allocation7], 1 }

</bundles_post_ra>
